<compile_context>
chip_gen: v5e
topology: v5e:2x2
jax: 0.10.0
libtpu: 0.0.40
codegen_flags: <defaults>
</compile_context>

<pallas_src>
import functools
import inspect

import jax
import jax.numpy as jnp
from jax import lax
from jax.experimental import pallas as pl
from jax.experimental.pallas import tpu as pltpu


# ------------------------- Pallas kernel -------------------------

def rwkv_layer_kernel(
    x_ref,
    ln0_w_ref, ln0_b_ref,
    tm_k_ref, tm_v_ref, tm_r_ref, t_decay_ref, t_first_ref,
    w_key_ref, w_val_ref, w_rec_ref, w_out_ref,
    ln1_w_ref, ln1_b_ref,
    cm_k_ref, cm_r_ref,
    w_cmk_ref, w_cmv_ref, w_cmr_ref,
    out_ref,
    k_sc, v_sc, r_sc, wkv_sc, state_sc, xs_sc, xs1_sc,
):
    Tt, Bb, C = x_ref.shape          # one time chunk of one batch block (Bb = 8 sublanes)
    TB = Tt * Bb
    FF = w_cmk_ref.shape[1]
    t_blk = pl.program_id(1)

    # -------- reset recurrent / time-shift carries at the first time chunk of a batch block
    @pl.when(t_blk == 0)
    def _():
        z = jnp.zeros((Bb, C), jnp.float32)
        state_sc[0] = z                                        # aa
        state_sc[1] = z                                        # bb
        state_sc[2] = jnp.full((Bb, C), -1e38, jnp.float32)    # pp
        xs_sc[pl.ds(0, Bb), :] = z                             # time-shift pad (t = -1) for ln0 path
        xs1_sc[pl.ds(0, Bb), :] = z                            # time-shift pad for ln1 path

    def layernorm(y, w_ref_, b_ref_):
        # single-pass statistics: var = E[x^2] - mean^2 (guarded against tiny negative)
        mu = jnp.mean(y, axis=-1, keepdims=True)
        ms = jnp.mean(y * y, axis=-1, keepdims=True)
        var = jnp.maximum(ms - mu * mu, 0.0)
        return (y - mu) * lax.rsqrt(var + 1e-5) * w_ref_[...] + b_ref_[...]

    def mm(lhs, w_ref_):
        w = w_ref_[...]
        return jnp.dot(lhs.astype(w.dtype), w, preferred_element_type=jnp.float32)

    x_in = x_ref[...].reshape(TB, C)

    # ---------------- ln0 + TokenMixing ----------------
    xn = layernorm(x_in, ln0_w_ref, ln0_b_ref)
    # Stage xn behind the previous chunk's last timestep: rows [0:Bb) hold x_{t-1} of the chunk
    # boundary, rows [Bb:Bb+TB) hold the current chunk. Time shift == reading an offset view.
    xs_sc[pl.ds(Bb, TB), :] = xn
    xx = xs_sc[pl.ds(0, TB), :]
    xs_sc[pl.ds(0, Bb), :] = xn[TB - Bb:TB, :]                 # carry for the next time chunk

    d = xn - xx                                                # shared mix delta
    k_sc[...] = mm(xx + tm_k_ref[...] * d, w_key_ref)
    v_sc[...] = mm(xx + tm_v_ref[...] * d, w_val_ref)
    r_sc[...] = jax.nn.sigmoid(mm(xx + tm_r_ref[...] * d, w_rec_ref)).astype(jnp.bfloat16)

    decay = jnp.broadcast_to(-jnp.exp(t_decay_ref[...]), (Bb, C))   # hoisted out of the loop
    first = jnp.broadcast_to(t_first_ref[...], (Bb, C))

    # ---------------- numerically-stable RWKV-v4 WKV recurrence ----------------
    # Per-timestep (Bb, C) loads/stores keep live state to the carry + one row (no spills).
    def step(t, carry):
        aa, bb, pp = carry
        off = pl.multiple_of(t * Bb, Bb)
        kt = k_sc[pl.ds(off, Bb), :]
        vt = v_sc[pl.ds(off, Bb), :]
        ww = first + kt
        qq = jnp.maximum(pp, ww)
        e1 = jnp.exp(pp - qq)
        e2 = jnp.exp(ww - qq)
        wkv_sc[pl.ds(off, Bb), :] = (e1 * aa + e2 * vt) / (e1 * bb + e2)   # exact divide
        ww2 = pp + decay
        qq2 = jnp.maximum(ww2, kt)
        e1 = jnp.exp(ww2 - qq2)
        e2 = jnp.exp(kt - qq2)
        return e1 * aa + e2 * vt, e1 * bb + e2, qq2

    aa, bb, pp = lax.fori_loop(0, Tt, step,
                               (state_sc[0], state_sc[1], state_sc[2]))
    state_sc[0] = aa
    state_sc[1] = bb
    state_sc[2] = pp
    # TODO(synk): (aa, bb, pp) == PyTorch's self.hidden; forward() does not return it, but for
    # streaming / chunked-sequence use it should be emitted as an extra kernel output.

    att = mm(r_sc[...].astype(jnp.float32) * wkv_sc[...], w_out_ref)
    x1 = x_in + att

    # ---------------- ln1 + ChannelMixing ----------------
    xn1 = layernorm(x1, ln1_w_ref, ln1_b_ref)
    xs1_sc[pl.ds(Bb, TB), :] = xn1
    xx1 = xs1_sc[pl.ds(0, TB), :]
    xs1_sc[pl.ds(0, Bb), :] = xn1[TB - Bb:TB, :]

    d1 = xn1 - xx1
    rr = jax.nn.sigmoid(mm(xx1 + cm_r_ref[...] * d1, w_cmr_ref))
    mix_k = (xx1 + cm_k_ref[...] * d1).astype(jnp.bfloat16)

    # FF-tiled relu^2 MLP: never materialize the full (TB, FF) intermediate.
    ft = FF if (FF <= 512 or FF % 512 != 0) else 512
    kv = jnp.zeros((TB, C), jnp.float32)
    for f in range(FF // ft):                                  # static unroll, static slices
        kk = jnp.dot(mix_k, w_cmk_ref[:, pl.ds(f * ft, ft)],
                     preferred_element_type=jnp.float32)
        kk = jnp.square(jnp.maximum(kk, 0.0)).astype(jnp.bfloat16)
        kv = kv + jnp.dot(kk, w_cmv_ref[pl.ds(f * ft, ft), :],
                          preferred_element_type=jnp.float32)

    out_ref[...] = (x1 + rr * kv).reshape(Tt, Bb, C)


# ------------------------- wrapper -------------------------

PARAM_ORDER = [
    "ln0_w", "ln0_b",
    "tm_k", "tm_v", "tm_r", "t_decay", "t_first",
    "w_key", "w_value", "w_recept", "w_out",
    "ln1_w", "ln1_b",
    "cm_k", "cm_r",
    "w_cm_key", "w_cm_value", "w_cm_recept",
]

MATMUL_WEIGHTS = frozenset(
    ["w_key", "w_value", "w_recept", "w_out",
     "w_cm_key", "w_cm_value", "w_cm_recept"])

BATCH_BLOCK = 8   # sublane-dense batch block per grid step


def _vmem_limit_bytes():
    # Generation-aware: ~75% of per-core VMEM (48 MiB on v7x, 96 MiB on v5e/v6e).
    try:
        return int(pltpu.get_tpu_info().vmem_capacity_bytes * 3 // 4)
    except Exception:
        return 48 * 1024 * 1024


def _single_buffer_kwargs():
    # Constant-index-map operands (weights, per-channel vectors) don't need double buffering.
    try:
        if "pipeline_mode" in inspect.signature(pl.BlockSpec).parameters:
            return {"pipeline_mode": pl.Buffered(1)}
    except Exception:
        pass
    return {}


@functools.partial(jax.jit, static_argnames=("time_block",))
def rwkv_layer_forward(x, params, time_block=128):
    B, T, C = x.shape
    FF = params["w_cm_key"].shape[1]
    assert C % 128 == 0 and FF % 128 == 0, \
        "pad d_model / dim_feedforward to multiples of 128 (lane-dense, unmasked stores)"
    # TODO(synk): support non-128-aligned C via masked LayerNorm over padded channels.

    Bb = BATCH_BLOCK
    Bpad = ((B + Bb - 1) // Bb) * Bb
    Tt = min(time_block, T)
    Tpad = ((T + Tt - 1) // Tt) * Tt

    # Layout plumbing in the wrapper: (B,T,C) -> (Tpad,Bpad,C). The batch block fills vreg
    # sublanes; the time axis is the streamed (sequential-carry) grid axis.
    x_t = jnp.transpose(x, (1, 0, 2))
    x_t = jnp.pad(x_t, ((0, Tpad - T), (0, Bpad - B), (0, 0)))

    sb = _single_buffer_kwargs()

    def const_spec(shape):
        nd = len(shape)
        return pl.BlockSpec(shape, lambda b, t, _nd=nd: (0,) * _nd, **sb)

    in_specs = [pl.BlockSpec((Tt, Bb, C), lambda b, t: (t, b, 0))]   # x: streamed per time chunk
    in_specs += [const_spec(params[n].shape) for n in PARAM_ORDER]

    # bf16 weights for the seven matmuls; LN params / per-channel vectors stay f32.
    args = [params[n].astype(jnp.bfloat16) if n in MATMUL_WEIGHTS else params[n]
            for n in PARAM_ORDER]

    flops = 2 * Bpad * Tpad * (4 * C * C + 2 * C * FF)
    transcendentals = Bpad * Tpad * 7 * C
    bytes_accessed = (2 * 4 * Tpad * Bpad * C            # x in + out (f32)
                      + 2 * (4 * C * C + 2 * C * FF)     # bf16 weights (single-buffered)
                      + 4 * 10 * C)                      # per-channel vectors

    out_t = pl.pallas_call(
        rwkv_layer_kernel,
        out_shape=jax.ShapeDtypeStruct((Tpad, Bpad, C), jnp.float32),
        grid_spec=pltpu.PrefetchScalarGridSpec(
            num_scalar_prefetch=0,
            grid=(Bpad // Bb, Tpad // Tt),               # batch blocks (parallel) x time chunks (carry)
            in_specs=in_specs,
            out_specs=pl.BlockSpec((Tt, Bb, C), lambda b, t: (t, b, 0)),
            scratch_shapes=[
                pltpu.VMEM((Tt * Bb, C), jnp.float32),           # k
                pltpu.VMEM((Tt * Bb, C), jnp.float32),           # v
                pltpu.VMEM((Tt * Bb, C), jnp.bfloat16),          # r (sigmoid output, bf16)
                pltpu.VMEM((Tt * Bb, C), jnp.float32),           # wkv
                pltpu.VMEM((3, Bb, C), jnp.float32),             # aa / bb / pp carry
                pltpu.VMEM(((Tt + 1) * Bb, C), jnp.float32),     # staged xn  (+ prev row block)
                pltpu.VMEM(((Tt + 1) * Bb, C), jnp.float32),     # staged xn1 (+ prev row block)
            ],
        ),
        compiler_params=pltpu.CompilerParams(
            dimension_semantics=("parallel", "arbitrary"),
            vmem_limit_bytes=_vmem_limit_bytes()),
        cost_estimate=pl.CostEstimate(
            flops=flops, transcendentals=transcendentals,
            bytes_accessed=bytes_accessed),
    )(x_t, *args)
    # TODO(synk): for tiny B (single batch block) on v7x, add a second "parallel" grid axis over
    # output-channel / FF tiles so the second TensorCore is not idle.

    return jnp.transpose(out_t[:T, :B, :], (1, 0, 2))


# ------------------------- deterministic param init -------------------------

def make_params(d_model, dim_feedforward, layer_id, num_layers, key):
    C, FF = d_model, dim_feedforward
    ks = jax.random.split(key, 12)
    ratio_0_to_1 = layer_id / max(num_layers - 1, 1)
    ratio_1_to_almost0 = 1.0 - layer_id / num_layers

    i = jnp.arange(C, dtype=jnp.float32)
    ddd = (i / C).reshape(1, C)

    p = {}
    p["ln0_w"] = jnp.ones((1, C), jnp.float32) + 0.01 * jax.random.normal(ks[0], (1, C))
    p["ln0_b"] = 0.01 * jax.random.normal(ks[1], (1, C))
    p["ln1_w"] = jnp.ones((1, C), jnp.float32) + 0.01 * jax.random.normal(ks[2], (1, C))
    p["ln1_b"] = 0.01 * jax.random.normal(ks[3], (1, C))

    p["tm_k"] = jnp.power(ddd, ratio_1_to_almost0)
    p["tm_v"] = jnp.power(ddd, ratio_1_to_almost0) + 0.3 * ratio_0_to_1
    p["tm_r"] = jnp.power(ddd, 0.5 * ratio_1_to_almost0)
    decay_speed = -5.0 + 8.0 * jnp.power(i / max(C - 1, 1), 0.7 + 1.3 * ratio_0_to_1)
    p["t_decay"] = decay_speed.reshape(1, C)
    zigzag = 0.5 * (jnp.mod(i, 3.0) - 1.0)
    p["t_first"] = (jnp.log(0.3) + zigzag).reshape(1, C)

    scale_c = 1.0 / jnp.sqrt(jnp.float32(C))
    scale_ff = 1.0 / jnp.sqrt(jnp.float32(FF))
    p["w_key"] = scale_c * jax.random.normal(ks[4], (C, C), jnp.float32)
    p["w_value"] = scale_c * jax.random.normal(ks[5], (C, C), jnp.float32)
    p["w_recept"] = scale_c * jax.random.normal(ks[6], (C, C), jnp.float32)
    p["w_out"] = scale_c * jax.random.normal(ks[7], (C, C), jnp.float32)

    p["cm_k"] = jnp.power(ddd, ratio_1_to_almost0)
    p["cm_r"] = jnp.power(ddd, ratio_1_to_almost0)
    p["w_cm_key"] = scale_c * jax.random.normal(ks[8], (C, FF), jnp.float32)
    p["w_cm_value"] = scale_ff * jax.random.normal(ks[9], (FF, C), jnp.float32)
    p["w_cm_recept"] = scale_c * jax.random.normal(ks[10], (C, C), jnp.float32)
    return p


# ------------------------- pure-JAX reference -------------------------

def rwkv_layer_ref(x, p, matmul_dtype=jnp.float32):
    if matmul_dtype == jnp.float32:
        def mm(a, w):
            return jnp.einsum("btc,cd->btd", a, w,
                              precision=jax.lax.Precision.HIGHEST)
    else:
        def mm(a, w):
            return jnp.einsum("btc,cd->btd",
                              a.astype(matmul_dtype), w.astype(matmul_dtype),
                              preferred_element_type=jnp.float32)

    def ln(y, w, b):
        mu = jnp.mean(y, -1, keepdims=True)
        var = jnp.mean((y - mu) ** 2, -1, keepdims=True)
        return (y - mu) * lax.rsqrt(var + 1e-5) * w + b

    def tshift(y):
        return jnp.concatenate([jnp.zeros_like(y[:, :1]), y[:, :-1]], axis=1)

    B, T, C = x.shape
    xn = ln(x, p["ln0_w"], p["ln0_b"])
    xx = tshift(xn)
    xk = xn * p["tm_k"] + xx * (1 - p["tm_k"])
    xv = xn * p["tm_v"] + xx * (1 - p["tm_v"])
    xr = xn * p["tm_r"] + xx * (1 - p["tm_r"])
    k = mm(xk, p["w_key"]); v = mm(xv, p["w_value"])
    r = jax.nn.sigmoid(mm(xr, p["w_recept"]))
    decay = -jnp.exp(p["t_decay"]); first = p["t_first"]

    def step(carry, kv_t):
        aa, bb, pp = carry
        kt, vt = kv_t
        ww = first + kt
        qq = jnp.maximum(pp, ww)
        e1 = jnp.exp(pp - qq); e2 = jnp.exp(ww - qq)
        wkv = (e1 * aa + e2 * vt) / (e1 * bb + e2)
        ww2 = pp + decay
        qq2 = jnp.maximum(ww2, kt)
        e1 = jnp.exp(ww2 - qq2); e2 = jnp.exp(kt - qq2)
        return (e1 * aa + e2 * vt, e1 * bb + e2, qq2), wkv

    init = (jnp.zeros((B, C)), jnp.zeros((B, C)), jnp.full((B, C), -1e38))
    _, wkv = lax.scan(step, init, (jnp.swapaxes(k, 0, 1), jnp.swapaxes(v, 0, 1)))
    wkv = jnp.swapaxes(wkv, 0, 1)
    att = mm(r * wkv, p["w_out"])
    x1 = x + att

    xn1 = ln(x1, p["ln1_w"], p["ln1_b"])
    xx1 = tshift(xn1)
    xk1 = xn1 * p["cm_k"] + xx1 * (1 - p["cm_k"])
    xr1 = xn1 * p["cm_r"] + xx1 * (1 - p["cm_r"])
    kk = jnp.square(jnp.maximum(mm(xk1, p["w_cm_key"]), 0.0))
    kv = mm(kk, p["w_cm_value"])
    rr = jax.nn.sigmoid(mm(xr1, p["w_cm_recept"]))
    return x1 + rr * kv


# ------------------------- main -------------------------

if __name__ == "__main__":
    # Lane-friendly small shapes: d_model=128, dim_feedforward=256, batch=2, seq=16.
    B, T, C, FF = 2, 16, 128, 256
    layer_id, num_layers = 0, 2

    key = jax.random.PRNGKey(0)
    kx, kp = jax.random.split(key)
    x = jax.random.normal(kx, (B, T, C), jnp.float32)
    params = make_params(C, FF, layer_id, num_layers, kp)

    # time_block=8 -> 2 time chunks: exercises the carried WKV state / time-shift carry path.
    out = jax.block_until_ready(rwkv_layer_forward(x, params, time_block=8))

    # Precision-matched reference (bf16 matmul inputs, f32 accumulate) — tight tolerance.
    ref_bf16 = jax.block_until_ready(rwkv_layer_ref(x, params, jnp.bfloat16))
    # Full-f32 reference — loose tolerance (bf16 weight quantization).
    ref_f32 = jax.block_until_ready(rwkv_layer_ref(x, params, jnp.float32))

    assert out.shape == (B, T, C)
    assert bool(jnp.all(jnp.isfinite(out)))
    assert bool(jnp.allclose(out, ref_bf16, atol=1e-2, rtol=1e-2))
    assert bool(jnp.allclose(out, ref_f32, atol=5e-2, rtol=5e-2))

    print("KERNEL_OK")
</pallas_src>

<mosaic_0001>
module attributes {stable_mosaic.version = 11 : i64} {
  func.func @rwkv_layer_kernel(%arg0: i32, %arg1: i32, %arg2: memref<8x8x128xf32, #tpu.memory_space<vmem>>, %arg3: memref<1x128xf32, #tpu.memory_space<vmem>>, %arg4: memref<1x128xf32, #tpu.memory_space<vmem>>, %arg5: memref<1x128xf32, #tpu.memory_space<vmem>>, %arg6: memref<1x128xf32, #tpu.memory_space<vmem>>, %arg7: memref<1x128xf32, #tpu.memory_space<vmem>>, %arg8: memref<1x128xf32, #tpu.memory_space<vmem>>, %arg9: memref<1x128xf32, #tpu.memory_space<vmem>>, %arg10: memref<128x128xbf16, #tpu.memory_space<vmem>>, %arg11: memref<128x128xbf16, #tpu.memory_space<vmem>>, %arg12: memref<128x128xbf16, #tpu.memory_space<vmem>>, %arg13: memref<128x128xbf16, #tpu.memory_space<vmem>>, %arg14: memref<1x128xf32, #tpu.memory_space<vmem>>, %arg15: memref<1x128xf32, #tpu.memory_space<vmem>>, %arg16: memref<1x128xf32, #tpu.memory_space<vmem>>, %arg17: memref<1x128xf32, #tpu.memory_space<vmem>>, %arg18: memref<128x256xbf16, #tpu.memory_space<vmem>>, %arg19: memref<256x128xbf16, #tpu.memory_space<vmem>>, %arg20: memref<128x128xbf16, #tpu.memory_space<vmem>>, %arg21: memref<8x8x128xf32, #tpu.memory_space<vmem>>, %arg22: memref<64x128xf32, #tpu.memory_space<vmem>>, %arg23: memref<64x128xf32, #tpu.memory_space<vmem>>, %arg24: memref<64x128xbf16, #tpu.memory_space<vmem>>, %arg25: memref<64x128xf32, #tpu.memory_space<vmem>>, %arg26: memref<3x8x128xf32, #tpu.memory_space<vmem>>, %arg27: memref<72x128xf32, #tpu.memory_space<vmem>>, %arg28: memref<72x128xf32, #tpu.memory_space<vmem>>) attributes {dimension_semantics = [#tpu.dimension_semantics<parallel>, #tpu.dimension_semantics<arbitrary>], iteration_bounds = array<i64: 1, 2>, scalar_prefetch = 0 : i64, scratch_operands = 7 : i64, tpu.core_type = #tpu.core_type<tc>, window_params = [{transform_indices = @transform_0, window_bounds = array<i64: 8, 8, 128>}, {pipeline_mode = #tpu.pipeline_mode<synchronous>, transform_indices = @transform_1, window_bounds = array<i64: 1, 128>}, {pipeline_mode = #tpu.pipeline_mode<synchronous>, transform_indices = @transform_2, window_bounds = array<i64: 1, 128>}, {pipeline_mode = #tpu.pipeline_mode<synchronous>, transform_indices = @transform_3, window_bounds = array<i64: 1, 128>}, {pipeline_mode = #tpu.pipeline_mode<synchronous>, transform_indices = @transform_4, window_bounds = array<i64: 1, 128>}, {pipeline_mode = #tpu.pipeline_mode<synchronous>, transform_indices = @transform_5, window_bounds = array<i64: 1, 128>}, {pipeline_mode = #tpu.pipeline_mode<synchronous>, transform_indices = @transform_6, window_bounds = array<i64: 1, 128>}, {pipeline_mode = #tpu.pipeline_mode<synchronous>, transform_indices = @transform_7, window_bounds = array<i64: 1, 128>}, {pipeline_mode = #tpu.pipeline_mode<synchronous>, transform_indices = @transform_8, window_bounds = array<i64: 128, 128>}, {pipeline_mode = #tpu.pipeline_mode<synchronous>, transform_indices = @transform_9, window_bounds = array<i64: 128, 128>}, {pipeline_mode = #tpu.pipeline_mode<synchronous>, transform_indices = @transform_10, window_bounds = array<i64: 128, 128>}, {pipeline_mode = #tpu.pipeline_mode<synchronous>, transform_indices = @transform_11, window_bounds = array<i64: 128, 128>}, {pipeline_mode = #tpu.pipeline_mode<synchronous>, transform_indices = @transform_12, window_bounds = array<i64: 1, 128>}, {pipeline_mode = #tpu.pipeline_mode<synchronous>, transform_indices = @transform_13, window_bounds = array<i64: 1, 128>}, {pipeline_mode = #tpu.pipeline_mode<synchronous>, transform_indices = @transform_14, window_bounds = array<i64: 1, 128>}, {pipeline_mode = #tpu.pipeline_mode<synchronous>, transform_indices = @transform_15, window_bounds = array<i64: 1, 128>}, {pipeline_mode = #tpu.pipeline_mode<synchronous>, transform_indices = @transform_16, window_bounds = array<i64: 128, 256>}, {pipeline_mode = #tpu.pipeline_mode<synchronous>, transform_indices = @transform_17, window_bounds = array<i64: 256, 128>}, {pipeline_mode = #tpu.pipeline_mode<synchronous>, transform_indices = @transform_18, window_bounds = array<i64: 128, 128>}, {transform_indices = @transform_19, window_bounds = array<i64: 8, 8, 128>}]} {
    %c0_i32 = arith.constant 0 : i32
    %0 = arith.cmpi eq, %arg1, %c0_i32 : i32
    %1 = arith.extui %0 : i1 to i32
    %c0_i32_0 = arith.constant 0 : i32
    %2 = arith.cmpi ne, %1, %c0_i32_0 : i32
    scf.if %2 {
      %cst_104 = arith.constant 0.000000e+00 : f32
      %162 = vector.broadcast %cst_104 : f32 to vector<8x128xf32>
      %c0_105 = arith.constant 0 : index
      %c0_106 = arith.constant 0 : index
      %c0_107 = arith.constant 0 : index
      %163 = vector.load %arg26[%c0_105, %c0_106, %c0_107] : memref<3x8x128xf32, #tpu.memory_space<vmem>>, vector<1x8x128xf32>
      %164 = vector.shape_cast %163 : vector<1x8x128xf32> to vector<8x128xf32>
      %165 = vector.shape_cast %162 : vector<8x128xf32> to vector<1x8x128xf32>
      tpu.vector_store %arg26[%c0_105, %c0_106, %c0_107], %165 {strides = array<i32>} : memref<3x8x128xf32, #tpu.memory_space<vmem>>, vector<1x8x128xf32>,
      %c1_108 = arith.constant 1 : index
      %c0_109 = arith.constant 0 : index
      %c0_110 = arith.constant 0 : index
      %166 = vector.load %arg26[%c1_108, %c0_109, %c0_110] : memref<3x8x128xf32, #tpu.memory_space<vmem>>, vector<1x8x128xf32>
      %167 = vector.shape_cast %166 : vector<1x8x128xf32> to vector<8x128xf32>
      %168 = vector.shape_cast %162 : vector<8x128xf32> to vector<1x8x128xf32>
      tpu.vector_store %arg26[%c1_108, %c0_109, %c0_110], %168 {strides = array<i32>} : memref<3x8x128xf32, #tpu.memory_space<vmem>>, vector<1x8x128xf32>,
      %cst_111 = arith.constant -9.99999968E+37 : f32
      %169 = vector.broadcast %cst_111 : f32 to vector<8x128xf32>
      %c2_112 = arith.constant 2 : index
      %c0_113 = arith.constant 0 : index
      %c0_114 = arith.constant 0 : index
      %170 = vector.load %arg26[%c2_112, %c0_113, %c0_114] : memref<3x8x128xf32, #tpu.memory_space<vmem>>, vector<1x8x128xf32>
      %171 = vector.shape_cast %170 : vector<1x8x128xf32> to vector<8x128xf32>
      %172 = vector.shape_cast %169 : vector<8x128xf32> to vector<1x8x128xf32>
      tpu.vector_store %arg26[%c2_112, %c0_113, %c0_114], %172 {strides = array<i32>} : memref<3x8x128xf32, #tpu.memory_space<vmem>>, vector<1x8x128xf32>,
      %c0_115 = arith.constant 0 : index
      %c0_116 = arith.constant 0 : index
      %173 = vector.load %arg27[%c0_115, %c0_116] : memref<72x128xf32, #tpu.memory_space<vmem>>, vector<8x128xf32>
      tpu.vector_store %arg27[%c0_115, %c0_116], %162 {strides = array<i32>} : memref<72x128xf32, #tpu.memory_space<vmem>>, vector<8x128xf32>,
      %c0_117 = arith.constant 0 : index
      %c0_118 = arith.constant 0 : index
      %174 = vector.load %arg28[%c0_117, %c0_118] : memref<72x128xf32, #tpu.memory_space<vmem>>, vector<8x128xf32>
      tpu.vector_store %arg28[%c0_117, %c0_118], %162 {strides = array<i32>} : memref<72x128xf32, #tpu.memory_space<vmem>>, vector<8x128xf32>,
    } else {
    }
    %c0 = arith.constant 0 : index
    %c0_1 = arith.constant 0 : index
    %c0_2 = arith.constant 0 : index
    %3 = vector.load %arg2[%c0, %c0_1, %c0_2] : memref<8x8x128xf32, #tpu.memory_space<vmem>>, vector<8x8x128xf32>
    %4 = vector.shape_cast %3 : vector<8x8x128xf32> to vector<64x128xf32>
    %cst = arith.constant dense<0.000000e+00> : vector<64xf32>
    %5 = vector.multi_reduction <add>, %4, %cst [1] : vector<64x128xf32> to vector<64xf32>
    %6 = vector.shape_cast %5 : vector<64xf32> to vector<64x1xf32>
    %cst_3 = arith.constant 1.280000e+02 : f32
    %7 = vector.broadcast %cst_3 : f32 to vector<64x1xf32>
    %8 = arith.divf %6, %7 : vector<64x1xf32>
    %9 = arith.mulf %4, %4 : vector<64x128xf32>
    %cst_4 = arith.constant dense<0.000000e+00> : vector<64xf32>
    %10 = vector.multi_reduction <add>, %9, %cst_4 [1] : vector<64x128xf32> to vector<64xf32>
    %11 = vector.shape_cast %10 : vector<64xf32> to vector<64x1xf32>
    %cst_5 = arith.constant 1.280000e+02 : f32
    %12 = vector.broadcast %cst_5 : f32 to vector<64x1xf32>
    %13 = arith.divf %11, %12 : vector<64x1xf32>
    %14 = arith.mulf %8, %8 : vector<64x1xf32>
    %15 = arith.subf %13, %14 : vector<64x1xf32>
    %cst_6 = arith.constant 0.000000e+00 : f32
    %16 = vector.broadcast %cst_6 : f32 to vector<64x1xf32>
    %17 = arith.maximumf %15, %16 : vector<64x1xf32>
    %18 = vector.broadcast %8 : vector<64x1xf32> to vector<64x128xf32>
    %19 = arith.subf %4, %18 : vector<64x128xf32>
    %cst_7 = arith.constant 9.99999974E-6 : f32
    %20 = vector.broadcast %cst_7 : f32 to vector<64x1xf32>
    %21 = arith.addf %17, %20 : vector<64x1xf32>
    %22 = math.rsqrt %21 : vector<64x1xf32>
    %23 = vector.broadcast %22 : vector<64x1xf32> to vector<64x128xf32>
    %24 = arith.mulf %19, %23 : vector<64x128xf32>
    %c0_8 = arith.constant 0 : index
    %c0_9 = arith.constant 0 : index
    %25 = vector.load %arg3[%c0_8, %c0_9] : memref<1x128xf32, #tpu.memory_space<vmem>>, vector<1x128xf32>
    %26 = vector.broadcast %25 : vector<1x128xf32> to vector<64x128xf32>
    %27 = arith.mulf %24, %26 : vector<64x128xf32>
    %c0_10 = arith.constant 0 : index
    %c0_11 = arith.constant 0 : index
    %28 = vector.load %arg4[%c0_10, %c0_11] : memref<1x128xf32, #tpu.memory_space<vmem>>, vector<1x128xf32>
    %29 = vector.broadcast %28 : vector<1x128xf32> to vector<64x128xf32>
    %30 = arith.addf %27, %29 : vector<64x128xf32>
    %c8 = arith.constant 8 : index
    %c0_12 = arith.constant 0 : index
    %31 = vector.load %arg27[%c8, %c0_12] : memref<72x128xf32, #tpu.memory_space<vmem>>, vector<64x128xf32>
    tpu.vector_store %arg27[%c8, %c0_12], %30 {strides = array<i32>} : memref<72x128xf32, #tpu.memory_space<vmem>>, vector<64x128xf32>,
    %c0_13 = arith.constant 0 : index
    %c0_14 = arith.constant 0 : index
    %32 = vector.load %arg27[%c0_13, %c0_14] : memref<72x128xf32, #tpu.memory_space<vmem>>, vector<64x128xf32>
    %33 = vector.extract_strided_slice %30 {offsets = [56, 0], sizes = [8, 128], strides = [1, 1]} : vector<64x128xf32> to vector<8x128xf32>
    %c0_15 = arith.constant 0 : index
    %c0_16 = arith.constant 0 : index
    %34 = vector.load %arg27[%c0_15, %c0_16] : memref<72x128xf32, #tpu.memory_space<vmem>>, vector<8x128xf32>
    tpu.vector_store %arg27[%c0_15, %c0_16], %33 {strides = array<i32>} : memref<72x128xf32, #tpu.memory_space<vmem>>, vector<8x128xf32>,
    %35 = arith.subf %30, %32 : vector<64x128xf32>
    %c0_17 = arith.constant 0 : index
    %c0_18 = arith.constant 0 : index
    %36 = vector.load %arg5[%c0_17, %c0_18] : memref<1x128xf32, #tpu.memory_space<vmem>>, vector<1x128xf32>
    %37 = vector.broadcast %36 : vector<1x128xf32> to vector<64x128xf32>
    %38 = arith.mulf %37, %35 : vector<64x128xf32>
    %39 = arith.addf %32, %38 : vector<64x128xf32>
    %c0_19 = arith.constant 0 : index
    %c0_20 = arith.constant 0 : index
    %40 = vector.load %arg10[%c0_19, %c0_20] : memref<128x128xbf16, #tpu.memory_space<vmem>>, vector<128x128xbf16>
    %41 = arith.truncf %39 : vector<64x128xf32> to vector<64x128xbf16>
    %cst_21 = arith.constant dense<0.000000e+00> : vector<64x128xf32>
    %42 = tpu.matmul %41, %40, %cst_21 {dimension_numbers = #tpu.dot_dimension_numbers<[1], [0], [0], [1], [0, 0, 1, 1], [], []>} : vector<64x128xbf16>, vector<128x128xbf16>, vector<64x128xf32> -> vector<64x128xf32>
    %c0_22 = arith.constant 0 : index
    %c0_23 = arith.constant 0 : index
    %43 = vector.load %arg22[%c0_22, %c0_23] : memref<64x128xf32, #tpu.memory_space<vmem>>, vector<64x128xf32>
    tpu.vector_store %arg22[%c0_22, %c0_23], %42 {strides = array<i32>} : memref<64x128xf32, #tpu.memory_space<vmem>>, vector<64x128xf32>,
    %c0_24 = arith.constant 0 : index
    %c0_25 = arith.constant 0 : index
    %44 = vector.load %arg6[%c0_24, %c0_25] : memref<1x128xf32, #tpu.memory_space<vmem>>, vector<1x128xf32>
    %45 = vector.broadcast %44 : vector<1x128xf32> to vector<64x128xf32>
    %46 = arith.mulf %45, %35 : vector<64x128xf32>
    %47 = arith.addf %32, %46 : vector<64x128xf32>
    %c0_26 = arith.constant 0 : index
    %c0_27 = arith.constant 0 : index
    %48 = vector.load %arg11[%c0_26, %c0_27] : memref<128x128xbf16, #tpu.memory_space<vmem>>, vector<128x128xbf16>
    %49 = arith.truncf %47 : vector<64x128xf32> to vector<64x128xbf16>
    %cst_28 = arith.constant dense<0.000000e+00> : vector<64x128xf32>
    %50 = tpu.matmul %49, %48, %cst_28 {dimension_numbers = #tpu.dot_dimension_numbers<[1], [0], [0], [1], [0, 0, 1, 1], [], []>} : vector<64x128xbf16>, vector<128x128xbf16>, vector<64x128xf32> -> vector<64x128xf32>
    %c0_29 = arith.constant 0 : index
    %c0_30 = arith.constant 0 : index
    %51 = vector.load %arg23[%c0_29, %c0_30] : memref<64x128xf32, #tpu.memory_space<vmem>>, vector<64x128xf32>
    tpu.vector_store %arg23[%c0_29, %c0_30], %50 {strides = array<i32>} : memref<64x128xf32, #tpu.memory_space<vmem>>, vector<64x128xf32>,
    %c0_31 = arith.constant 0 : index
    %c0_32 = arith.constant 0 : index
    %52 = vector.load %arg7[%c0_31, %c0_32] : memref<1x128xf32, #tpu.memory_space<vmem>>, vector<1x128xf32>
    %53 = vector.broadcast %52 : vector<1x128xf32> to vector<64x128xf32>
    %54 = arith.mulf %53, %35 : vector<64x128xf32>
    %55 = arith.addf %32, %54 : vector<64x128xf32>
    %c0_33 = arith.constant 0 : index
    %c0_34 = arith.constant 0 : index
    %56 = vector.load %arg12[%c0_33, %c0_34] : memref<128x128xbf16, #tpu.memory_space<vmem>>, vector<128x128xbf16>
    %57 = arith.truncf %55 : vector<64x128xf32> to vector<64x128xbf16>
    %cst_35 = arith.constant dense<0.000000e+00> : vector<64x128xf32>
    %58 = tpu.matmul %57, %56, %cst_35 {dimension_numbers = #tpu.dot_dimension_numbers<[1], [0], [0], [1], [0, 0, 1, 1], [], []>} : vector<64x128xbf16>, vector<128x128xbf16>, vector<64x128xf32> -> vector<64x128xf32>
    %59 = arith.negf %58 : vector<64x128xf32>
    %60 = math.exp %59 : vector<64x128xf32>
    %cst_36 = arith.constant 1.000000e+00 : f32
    %61 = vector.broadcast %cst_36 : f32 to vector<64x128xf32>
    %62 = arith.addf %61, %60 : vector<64x128xf32>
    %63 = arith.divf %61, %62 : vector<64x128xf32>
    %64 = arith.truncf %63 : vector<64x128xf32> to vector<64x128xbf16>
    %c0_37 = arith.constant 0 : index
    %c0_38 = arith.constant 0 : index
    %65 = vector.load %arg24[%c0_37, %c0_38] : memref<64x128xbf16, #tpu.memory_space<vmem>>, vector<64x128xbf16>
    tpu.vector_store %arg24[%c0_37, %c0_38], %64 {strides = array<i32>} : memref<64x128xbf16, #tpu.memory_space<vmem>>, vector<64x128xbf16>,
    %c0_39 = arith.constant 0 : index
    %c0_40 = arith.constant 0 : index
    %66 = vector.load %arg8[%c0_39, %c0_40] : memref<1x128xf32, #tpu.memory_space<vmem>>, vector<1x128xf32>
    %67 = math.exp %66 : vector<1x128xf32>
    %cst_41 = arith.constant 0.000000e+00 : f32
    %68 = vector.broadcast %cst_41 : f32 to vector<1x128xf32>
    %69 = arith.subf %68, %67 : vector<1x128xf32>
    %70 = vector.shape_cast %69 : vector<1x128xf32> to vector<1x128xf32>
    %71 = vector.broadcast %70 : vector<1x128xf32> to vector<8x128xf32>
    %c0_42 = arith.constant 0 : index
    %c0_43 = arith.constant 0 : index
    %72 = vector.load %arg9[%c0_42, %c0_43] : memref<1x128xf32, #tpu.memory_space<vmem>>, vector<1x128xf32>
    %73 = vector.shape_cast %72 : vector<1x128xf32> to vector<1x128xf32>
    %74 = vector.broadcast %73 : vector<1x128xf32> to vector<8x128xf32>
    %c0_44 = arith.constant 0 : index
    %c0_45 = arith.constant 0 : index
    %c0_46 = arith.constant 0 : index
    %75 = vector.load %arg26[%c0_44, %c0_45, %c0_46] : memref<3x8x128xf32, #tpu.memory_space<vmem>>, vector<1x8x128xf32>
    %76 = vector.shape_cast %75 : vector<1x8x128xf32> to vector<8x128xf32>
    %c1 = arith.constant 1 : index
    %c0_47 = arith.constant 0 : index
    %c0_48 = arith.constant 0 : index
    %77 = vector.load %arg26[%c1, %c0_47, %c0_48] : memref<3x8x128xf32, #tpu.memory_space<vmem>>, vector<1x8x128xf32>
    %78 = vector.shape_cast %77 : vector<1x8x128xf32> to vector<8x128xf32>
    %c2 = arith.constant 2 : index
    %c0_49 = arith.constant 0 : index
    %c0_50 = arith.constant 0 : index
    %79 = vector.load %arg26[%c2, %c0_49, %c0_50] : memref<3x8x128xf32, #tpu.memory_space<vmem>>, vector<1x8x128xf32>
    %80 = vector.shape_cast %79 : vector<1x8x128xf32> to vector<8x128xf32>
    %c0_i32_51 = arith.constant 0 : i32
    %c8_i32 = arith.constant 8 : i32
    %81 = arith.addi %c0_i32_51, %c8_i32 : i32
    %c1_i32 = arith.constant 1 : i32
    %82:3 = scf.for %arg29 = %c0_i32_51 to %81 step %c1_i32 iter_args(%arg30 = %76, %arg31 = %78, %arg32 = %80) -> (vector<8x128xf32>, vector<8x128xf32>, vector<8x128xf32>)  : i32 {
      %c8_i32_104 = arith.constant 8 : i32
      %162 = arith.muli %arg29, %c8_i32_104 : i32
      %163 = tpu.assume_multiple %162, 8 : i32
      %164 = arith.index_cast %163 : i32 to index
      %c0_105 = arith.constant 0 : index
      %165 = vector.load %arg22[%164, %c0_105] : memref<64x128xf32, #tpu.memory_space<vmem>>, vector<8x128xf32>
      %166 = arith.index_cast %163 : i32 to index
      %c0_106 = arith.constant 0 : index
      %167 = vector.load %arg23[%166, %c0_106] : memref<64x128xf32, #tpu.memory_space<vmem>>, vector<8x128xf32>
      %168 = arith.addf %74, %165 : vector<8x128xf32>
      %169 = arith.maximumf %arg32, %168 : vector<8x128xf32>
      %170 = arith.subf %arg32, %169 : vector<8x128xf32>
      %171 = math.exp %170 : vector<8x128xf32>
      %172 = arith.subf %168, %169 : vector<8x128xf32>
      %173 = math.exp %172 : vector<8x128xf32>
      %174 = arith.mulf %171, %arg30 : vector<8x128xf32>
      %175 = arith.mulf %173, %167 : vector<8x128xf32>
      %176 = arith.addf %174, %175 : vector<8x128xf32>
      %177 = arith.mulf %171, %arg31 : vector<8x128xf32>
      %178 = arith.addf %177, %173 : vector<8x128xf32>
      %179 = arith.divf %176, %178 : vector<8x128xf32>
      %180 = arith.index_cast %163 : i32 to index
      %c0_107 = arith.constant 0 : index
      %181 = vector.load %arg25[%180, %c0_107] : memref<64x128xf32, #tpu.memory_space<vmem>>, vector<8x128xf32>
      tpu.vector_store %arg25[%180, %c0_107], %179 {strides = array<i32>} : memref<64x128xf32, #tpu.memory_space<vmem>>, vector<8x128xf32>,
      %182 = arith.addf %arg32, %71 : vector<8x128xf32>
      %183 = arith.maximumf %182, %165 : vector<8x128xf32>
      %184 = arith.subf %182, %183 : vector<8x128xf32>
      %185 = math.exp %184 : vector<8x128xf32>
      %186 = arith.subf %165, %183 : vector<8x128xf32>
      %187 = math.exp %186 : vector<8x128xf32>
      %188 = arith.mulf %185, %arg30 : vector<8x128xf32>
      %189 = arith.mulf %187, %167 : vector<8x128xf32>
      %190 = arith.addf %188, %189 : vector<8x128xf32>
      %191 = arith.mulf %185, %arg31 : vector<8x128xf32>
      %192 = arith.addf %191, %187 : vector<8x128xf32>
      scf.yield %190, %192, %183 : vector<8x128xf32>, vector<8x128xf32>, vector<8x128xf32>
    }
    %c8_i32_52 = arith.constant 8 : i32
    %c0_53 = arith.constant 0 : index
    %c0_54 = arith.constant 0 : index
    %c0_55 = arith.constant 0 : index
    %83 = vector.load %arg26[%c0_53, %c0_54, %c0_55] : memref<3x8x128xf32, #tpu.memory_space<vmem>>, vector<1x8x128xf32>
    %84 = vector.shape_cast %83 : vector<1x8x128xf32> to vector<8x128xf32>
    %85 = vector.shape_cast %82#0 : vector<8x128xf32> to vector<1x8x128xf32>
    tpu.vector_store %arg26[%c0_53, %c0_54, %c0_55], %85 {strides = array<i32>} : memref<3x8x128xf32, #tpu.memory_space<vmem>>, vector<1x8x128xf32>,
    %c1_56 = arith.constant 1 : index
    %c0_57 = arith.constant 0 : index
    %c0_58 = arith.constant 0 : index
    %86 = vector.load %arg26[%c1_56, %c0_57, %c0_58] : memref<3x8x128xf32, #tpu.memory_space<vmem>>, vector<1x8x128xf32>
    %87 = vector.shape_cast %86 : vector<1x8x128xf32> to vector<8x128xf32>
    %88 = vector.shape_cast %82#1 : vector<8x128xf32> to vector<1x8x128xf32>
    tpu.vector_store %arg26[%c1_56, %c0_57, %c0_58], %88 {strides = array<i32>} : memref<3x8x128xf32, #tpu.memory_space<vmem>>, vector<1x8x128xf32>,
    %c2_59 = arith.constant 2 : index
    %c0_60 = arith.constant 0 : index
    %c0_61 = arith.constant 0 : index
    %89 = vector.load %arg26[%c2_59, %c0_60, %c0_61] : memref<3x8x128xf32, #tpu.memory_space<vmem>>, vector<1x8x128xf32>
    %90 = vector.shape_cast %89 : vector<1x8x128xf32> to vector<8x128xf32>
    %91 = vector.shape_cast %82#2 : vector<8x128xf32> to vector<1x8x128xf32>
    tpu.vector_store %arg26[%c2_59, %c0_60, %c0_61], %91 {strides = array<i32>} : memref<3x8x128xf32, #tpu.memory_space<vmem>>, vector<1x8x128xf32>,
    %c0_62 = arith.constant 0 : index
    %c0_63 = arith.constant 0 : index
    %92 = vector.load %arg24[%c0_62, %c0_63] : memref<64x128xbf16, #tpu.memory_space<vmem>>, vector<64x128xbf16>
    %93 = arith.extf %92 : vector<64x128xbf16> to vector<64x128xf32>
    %c0_64 = arith.constant 0 : index
    %c0_65 = arith.constant 0 : index
    %94 = vector.load %arg25[%c0_64, %c0_65] : memref<64x128xf32, #tpu.memory_space<vmem>>, vector<64x128xf32>
    %95 = arith.mulf %93, %94 : vector<64x128xf32>
    %c0_66 = arith.constant 0 : index
    %c0_67 = arith.constant 0 : index
    %96 = vector.load %arg13[%c0_66, %c0_67] : memref<128x128xbf16, #tpu.memory_space<vmem>>, vector<128x128xbf16>
    %97 = arith.truncf %95 : vector<64x128xf32> to vector<64x128xbf16>
    %cst_68 = arith.constant dense<0.000000e+00> : vector<64x128xf32>
    %98 = tpu.matmul %97, %96, %cst_68 {dimension_numbers = #tpu.dot_dimension_numbers<[1], [0], [0], [1], [0, 0, 1, 1], [], []>} : vector<64x128xbf16>, vector<128x128xbf16>, vector<64x128xf32> -> vector<64x128xf32>
    %99 = arith.addf %4, %98 : vector<64x128xf32>
    %cst_69 = arith.constant dense<0.000000e+00> : vector<64xf32>
    %100 = vector.multi_reduction <add>, %99, %cst_69 [1] : vector<64x128xf32> to vector<64xf32>
    %101 = vector.shape_cast %100 : vector<64xf32> to vector<64x1xf32>
    %cst_70 = arith.constant 1.280000e+02 : f32
    %102 = vector.broadcast %cst_70 : f32 to vector<64x1xf32>
    %103 = arith.divf %101, %102 : vector<64x1xf32>
    %104 = arith.mulf %99, %99 : vector<64x128xf32>
    %cst_71 = arith.constant dense<0.000000e+00> : vector<64xf32>
    %105 = vector.multi_reduction <add>, %104, %cst_71 [1] : vector<64x128xf32> to vector<64xf32>
    %106 = vector.shape_cast %105 : vector<64xf32> to vector<64x1xf32>
    %cst_72 = arith.constant 1.280000e+02 : f32
    %107 = vector.broadcast %cst_72 : f32 to vector<64x1xf32>
    %108 = arith.divf %106, %107 : vector<64x1xf32>
    %109 = arith.mulf %103, %103 : vector<64x1xf32>
    %110 = arith.subf %108, %109 : vector<64x1xf32>
    %cst_73 = arith.constant 0.000000e+00 : f32
    %111 = vector.broadcast %cst_73 : f32 to vector<64x1xf32>
    %112 = arith.maximumf %110, %111 : vector<64x1xf32>
    %113 = vector.broadcast %103 : vector<64x1xf32> to vector<64x128xf32>
    %114 = arith.subf %99, %113 : vector<64x128xf32>
    %cst_74 = arith.constant 9.99999974E-6 : f32
    %115 = vector.broadcast %cst_74 : f32 to vector<64x1xf32>
    %116 = arith.addf %112, %115 : vector<64x1xf32>
    %117 = math.rsqrt %116 : vector<64x1xf32>
    %118 = vector.broadcast %117 : vector<64x1xf32> to vector<64x128xf32>
    %119 = arith.mulf %114, %118 : vector<64x128xf32>
    %c0_75 = arith.constant 0 : index
    %c0_76 = arith.constant 0 : index
    %120 = vector.load %arg14[%c0_75, %c0_76] : memref<1x128xf32, #tpu.memory_space<vmem>>, vector<1x128xf32>
    %121 = vector.broadcast %120 : vector<1x128xf32> to vector<64x128xf32>
    %122 = arith.mulf %119, %121 : vector<64x128xf32>
    %c0_77 = arith.constant 0 : index
    %c0_78 = arith.constant 0 : index
    %123 = vector.load %arg15[%c0_77, %c0_78] : memref<1x128xf32, #tpu.memory_space<vmem>>, vector<1x128xf32>
    %124 = vector.broadcast %123 : vector<1x128xf32> to vector<64x128xf32>
    %125 = arith.addf %122, %124 : vector<64x128xf32>
    %c8_79 = arith.constant 8 : index
    %c0_80 = arith.constant 0 : index
    %126 = vector.load %arg28[%c8_79, %c0_80] : memref<72x128xf32, #tpu.memory_space<vmem>>, vector<64x128xf32>
    tpu.vector_store %arg28[%c8_79, %c0_80], %125 {strides = array<i32>} : memref<72x128xf32, #tpu.memory_space<vmem>>, vector<64x128xf32>,
    %c0_81 = arith.constant 0 : index
    %c0_82 = arith.constant 0 : index
    %127 = vector.load %arg28[%c0_81, %c0_82] : memref<72x128xf32, #tpu.memory_space<vmem>>, vector<64x128xf32>
    %128 = vector.extract_strided_slice %125 {offsets = [56, 0], sizes = [8, 128], strides = [1, 1]} : vector<64x128xf32> to vector<8x128xf32>
    %c0_83 = arith.constant 0 : index
    %c0_84 = arith.constant 0 : index
    %129 = vector.load %arg28[%c0_83, %c0_84] : memref<72x128xf32, #tpu.memory_space<vmem>>, vector<8x128xf32>
    tpu.vector_store %arg28[%c0_83, %c0_84], %128 {strides = array<i32>} : memref<72x128xf32, #tpu.memory_space<vmem>>, vector<8x128xf32>,
    %130 = arith.subf %125, %127 : vector<64x128xf32>
    %c0_85 = arith.constant 0 : index
    %c0_86 = arith.constant 0 : index
    %131 = vector.load %arg17[%c0_85, %c0_86] : memref<1x128xf32, #tpu.memory_space<vmem>>, vector<1x128xf32>
    %132 = vector.broadcast %131 : vector<1x128xf32> to vector<64x128xf32>
    %133 = arith.mulf %132, %130 : vector<64x128xf32>
    %134 = arith.addf %127, %133 : vector<64x128xf32>
    %c0_87 = arith.constant 0 : index
    %c0_88 = arith.constant 0 : index
    %135 = vector.load %arg20[%c0_87, %c0_88] : memref<128x128xbf16, #tpu.memory_space<vmem>>, vector<128x128xbf16>
    %136 = arith.truncf %134 : vector<64x128xf32> to vector<64x128xbf16>
    %cst_89 = arith.constant dense<0.000000e+00> : vector<64x128xf32>
    %137 = tpu.matmul %136, %135, %cst_89 {dimension_numbers = #tpu.dot_dimension_numbers<[1], [0], [0], [1], [0, 0, 1, 1], [], []>} : vector<64x128xbf16>, vector<128x128xbf16>, vector<64x128xf32> -> vector<64x128xf32>
    %138 = arith.negf %137 : vector<64x128xf32>
    %139 = math.exp %138 : vector<64x128xf32>
    %cst_90 = arith.constant 1.000000e+00 : f32
    %140 = vector.broadcast %cst_90 : f32 to vector<64x128xf32>
    %141 = arith.addf %140, %139 : vector<64x128xf32>
    %142 = arith.divf %140, %141 : vector<64x128xf32>
    %c0_91 = arith.constant 0 : index
    %c0_92 = arith.constant 0 : index
    %143 = vector.load %arg16[%c0_91, %c0_92] : memref<1x128xf32, #tpu.memory_space<vmem>>, vector<1x128xf32>
    %144 = vector.broadcast %143 : vector<1x128xf32> to vector<64x128xf32>
    %145 = arith.mulf %144, %130 : vector<64x128xf32>
    %146 = arith.addf %127, %145 : vector<64x128xf32>
    %147 = arith.truncf %146 : vector<64x128xf32> to vector<64x128xbf16>
    %cst_93 = arith.constant 0.000000e+00 : f32
    %148 = vector.broadcast %cst_93 : f32 to vector<64x128xf32>
    %c0_94 = arith.constant 0 : index
    %c0_95 = arith.constant 0 : index
    %149 = vector.load %arg18[%c0_94, %c0_95] : memref<128x256xbf16, #tpu.memory_space<vmem>>, vector<128x256xbf16>
    %cst_96 = arith.constant dense<0.000000e+00> : vector<64x256xf32>
    %150 = tpu.matmul %147, %149, %cst_96 {dimension_numbers = #tpu.dot_dimension_numbers<[1], [0], [0], [1], [0, 0, 1, 1], [], []>} : vector<64x128xbf16>, vector<128x256xbf16>, vector<64x256xf32> -> vector<64x256xf32>
    %cst_97 = arith.constant 0.000000e+00 : f32
    %151 = vector.broadcast %cst_97 : f32 to vector<64x256xf32>
    %152 = arith.maximumf %150, %151 : vector<64x256xf32>
    %153 = arith.mulf %152, %152 : vector<64x256xf32>
    %154 = arith.truncf %153 : vector<64x256xf32> to vector<64x256xbf16>
    %c0_98 = arith.constant 0 : index
    %c0_99 = arith.constant 0 : index
    %155 = vector.load %arg19[%c0_98, %c0_99] : memref<256x128xbf16, #tpu.memory_space<vmem>>, vector<256x128xbf16>
    %cst_100 = arith.constant dense<0.000000e+00> : vector<64x128xf32>
    %156 = tpu.matmul %154, %155, %cst_100 {dimension_numbers = #tpu.dot_dimension_numbers<[1], [0], [0], [1], [0, 0, 1, 1], [], []>} : vector<64x256xbf16>, vector<256x128xbf16>, vector<64x128xf32> -> vector<64x128xf32>
    %157 = arith.addf %148, %156 : vector<64x128xf32>
    %158 = arith.mulf %142, %157 : vector<64x128xf32>
    %159 = arith.addf %99, %158 : vector<64x128xf32>
    %160 = vector.shape_cast %159 : vector<64x128xf32> to vector<8x8x128xf32>
    %c0_101 = arith.constant 0 : index
    %c0_102 = arith.constant 0 : index
    %c0_103 = arith.constant 0 : index
    %161 = vector.load %arg21[%c0_101, %c0_102, %c0_103] : memref<8x8x128xf32, #tpu.memory_space<vmem>>, vector<8x8x128xf32>
    tpu.vector_store %arg21[%c0_101, %c0_102, %c0_103], %160 {strides = array<i32>} : memref<8x8x128xf32, #tpu.memory_space<vmem>>, vector<8x8x128xf32>,
    return
  }
  func.func @transform_0(%arg0: i32, %arg1: i32) -> (i32, i32, i32) {
    %c0_i32 = arith.constant 0 : i32
    %c0_i32_0 = arith.constant 0 : i32
    return %arg1, %arg0, %c0_i32 : i32, i32, i32
  }
  func.func @transform_1(%arg0: i32, %arg1: i32) -> (i32, i32) {
    %c0_i32 = arith.constant 0 : i32
    %c0_i32_0 = arith.constant 0 : i32
    %c0_i32_1 = arith.constant 0 : i32
    return %c0_i32, %c0_i32_0 : i32, i32
  }
  func.func @transform_2(%arg0: i32, %arg1: i32) -> (i32, i32) {
    %c0_i32 = arith.constant 0 : i32
    %c0_i32_0 = arith.constant 0 : i32
    %c0_i32_1 = arith.constant 0 : i32
    return %c0_i32, %c0_i32_0 : i32, i32
  }
  func.func @transform_3(%arg0: i32, %arg1: i32) -> (i32, i32) {
    %c0_i32 = arith.constant 0 : i32
    %c0_i32_0 = arith.constant 0 : i32
    %c0_i32_1 = arith.constant 0 : i32
    return %c0_i32, %c0_i32_0 : i32, i32
  }
  func.func @transform_4(%arg0: i32, %arg1: i32) -> (i32, i32) {
    %c0_i32 = arith.constant 0 : i32
    %c0_i32_0 = arith.constant 0 : i32
    %c0_i32_1 = arith.constant 0 : i32
    return %c0_i32, %c0_i32_0 : i32, i32
  }
  func.func @transform_5(%arg0: i32, %arg1: i32) -> (i32, i32) {
    %c0_i32 = arith.constant 0 : i32
    %c0_i32_0 = arith.constant 0 : i32
    %c0_i32_1 = arith.constant 0 : i32
    return %c0_i32, %c0_i32_0 : i32, i32
  }
  func.func @transform_6(%arg0: i32, %arg1: i32) -> (i32, i32) {
    %c0_i32 = arith.constant 0 : i32
    %c0_i32_0 = arith.constant 0 : i32
    %c0_i32_1 = arith.constant 0 : i32
    return %c0_i32, %c0_i32_0 : i32, i32
  }
  func.func @transform_7(%arg0: i32, %arg1: i32) -> (i32, i32) {
    %c0_i32 = arith.constant 0 : i32
    %c0_i32_0 = arith.constant 0 : i32
    %c0_i32_1 = arith.constant 0 : i32
    return %c0_i32, %c0_i32_0 : i32, i32
  }
  func.func @transform_8(%arg0: i32, %arg1: i32) -> (i32, i32) {
    %c0_i32 = arith.constant 0 : i32
    %c0_i32_0 = arith.constant 0 : i32
    %c0_i32_1 = arith.constant 0 : i32
    return %c0_i32, %c0_i32_0 : i32, i32
  }
  func.func @transform_9(%arg0: i32, %arg1: i32) -> (i32, i32) {
    %c0_i32 = arith.constant 0 : i32
    %c0_i32_0 = arith.constant 0 : i32
    %c0_i32_1 = arith.constant 0 : i32
    return %c0_i32, %c0_i32_0 : i32, i32
  }
  func.func @transform_10(%arg0: i32, %arg1: i32) -> (i32, i32) {
    %c0_i32 = arith.constant 0 : i32
    %c0_i32_0 = arith.constant 0 : i32
    %c0_i32_1 = arith.constant 0 : i32
    return %c0_i32, %c0_i32_0 : i32, i32
  }
  func.func @transform_11(%arg0: i32, %arg1: i32) -> (i32, i32) {
    %c0_i32 = arith.constant 0 : i32
    %c0_i32_0 = arith.constant 0 : i32
    %c0_i32_1 = arith.constant 0 : i32
    return %c0_i32, %c0_i32_0 : i32, i32
  }
  func.func @transform_12(%arg0: i32, %arg1: i32) -> (i32, i32) {
    %c0_i32 = arith.constant 0 : i32
    %c0_i32_0 = arith.constant 0 : i32
    %c0_i32_1 = arith.constant 0 : i32
    return %c0_i32, %c0_i32_0 : i32, i32
  }
  func.func @transform_13(%arg0: i32, %arg1: i32) -> (i32, i32) {
    %c0_i32 = arith.constant 0 : i32
    %c0_i32_0 = arith.constant 0 : i32
    %c0_i32_1 = arith.constant 0 : i32
    return %c0_i32, %c0_i32_0 : i32, i32
  }
  func.func @transform_14(%arg0: i32, %arg1: i32) -> (i32, i32) {
    %c0_i32 = arith.constant 0 : i32
    %c0_i32_0 = arith.constant 0 : i32
    %c0_i32_1 = arith.constant 0 : i32
    return %c0_i32, %c0_i32_0 : i32, i32
  }
  func.func @transform_15(%arg0: i32, %arg1: i32) -> (i32, i32) {
    %c0_i32 = arith.constant 0 : i32
    %c0_i32_0 = arith.constant 0 : i32
    %c0_i32_1 = arith.constant 0 : i32
    return %c0_i32, %c0_i32_0 : i32, i32
  }
  func.func @transform_16(%arg0: i32, %arg1: i32) -> (i32, i32) {
    %c0_i32 = arith.constant 0 : i32
    %c0_i32_0 = arith.constant 0 : i32
    %c0_i32_1 = arith.constant 0 : i32
    return %c0_i32, %c0_i32_0 : i32, i32
  }
  func.func @transform_17(%arg0: i32, %arg1: i32) -> (i32, i32) {
    %c0_i32 = arith.constant 0 : i32
    %c0_i32_0 = arith.constant 0 : i32
    %c0_i32_1 = arith.constant 0 : i32
    return %c0_i32, %c0_i32_0 : i32, i32
  }
  func.func @transform_18(%arg0: i32, %arg1: i32) -> (i32, i32) {
    %c0_i32 = arith.constant 0 : i32
    %c0_i32_0 = arith.constant 0 : i32
    %c0_i32_1 = arith.constant 0 : i32
    return %c0_i32, %c0_i32_0 : i32, i32
  }
  func.func @transform_19(%arg0: i32, %arg1: i32) -> (i32, i32, i32) {
    %c0_i32 = arith.constant 0 : i32
    %c0_i32_0 = arith.constant 0 : i32
    return %arg1, %arg0, %c0_i32 : i32, i32, i32
  }
}

</mosaic_0001>

<bundles_post_ra>
// kernel: rwkv_layer_forward.1
= control target key start
LH: loop header
LB: loop body
LE: loop exit
PB: predicated region body
PF: predicated region fallthrough
CT: control target
= control target key end

     0   :  { %s3459_s30 = smov 0   ;;  %s3461_s20 = smov 0   ;;  %s4452_s0 = inlined_call_operand.vmem [shape: f32[16,8,128], index: 0, kind: input, shape index: {}]   ;;  %s4453_s1 = inlined_call_operand.vmem [shape: f32[1,128], index: 1, kind: input, shape index: {}]   ;;  %s4454_s2 = inlined_call_operand.vmem [shape: f32[1,128], index: 2, kind: input, shape index: {}]   ;;  %s4455_s3 = inlined_call_operand.vmem [shape: f32[1,128], index: 3, kind: input, shape index: {}]   ;;  %s4456_s4 = inlined_call_operand.vmem [shape: f32[1,128], index: 4, kind: input, shape index: {}]   ;;  %s4457_s5 = inlined_call_operand.vmem [shape: f32[1,128], index: 5, kind: input, shape index: {}]   ;;  %s4458_s6 = inlined_call_operand.vmem [shape: f32[1,128], index: 6, kind: input, shape index: {}]   ;;  %s4459_s7 = inlined_call_operand.vmem [shape: f32[1,128], index: 7, kind: input, shape index: {}]   ;;  %s4460_s8 = inlined_call_operand.vmem [shape: bf16[128,128], index: 8, kind: input, shape index: {}]   ;;  %s4461_s9 = inlined_call_operand.vmem [shape: bf16[128,128], index: 9, kind: input, shape index: {}]   ;;  %s4462_s10 = inlined_call_operand.vmem [shape: bf16[128,128], index: 10, kind: input, shape index: {}]   ;;  %s4463_s11 = inlined_call_operand.vmem [shape: bf16[128,128], index: 11, kind: input, shape index: {}]   ;;  %s4464_s12 = inlined_call_operand.vmem [shape: f32[1,128], index: 12, kind: input, shape index: {}]   ;;  %s4465_s13 = inlined_call_operand.vmem [shape: f32[1,128], index: 13, kind: input, shape index: {}]   ;;  %s4466_s14 = inlined_call_operand.vmem [shape: f32[1,128], index: 14, kind: input, shape index: {}]   ;;  %s4467_s15 = inlined_call_operand.vmem [shape: f32[1,128], index: 15, kind: input, shape index: {}]   ;;  %s4468_s16 = inlined_call_operand.vmem [shape: bf16[128,256], index: 16, kind: input, shape index: {}]   ;;  %s4469_s17 = inlined_call_operand.vmem [shape: bf16[256,128], index: 17, kind: input, shape index: {}]   ;;  %s4470_s18 = inlined_call_operand.vmem [shape: bf16[128,128], index: 18, kind: input, shape index: {}]   ;;  %s4471_s19 = inlined_call_operand.vmem [shape: f32[16,8,128], index: 19, kind: output, shape index: {}]  }
   0x1   :  { %4472 = sst [smem:[#allocation9_spill]] %s4452_s0  ;;  %s3457_s0 = smov 0  }
   0x2   :  { %4473 = sst [smem:[#allocation10_spill]] %s4453_s1 }
   0x3   :  { %4474 = sst [smem:[#allocation11_spill]] %s4454_s2 }
   0x4   :  { %4475 = sst [smem:[#allocation12_spill]] %s4455_s3 }
   0x5 LB: > { %s38_s21 = sadd.s32 1, %s3332_s30  ;;  %p2676_p0 = scmp.ge.s32.totalorder %s3336_s20, 1  ;;  %s3336_s20 = sphi %s3461_s20, %s29_s20   ;;  %s3332_s30 = sphi %s3459_s30, %s4490_s30   ;;  %s3328_s0 = sphi %s3457_s0, %s4489_s0  }
   0x6   : > { %p39_p1 = scmp.ge.s32.totalorder %s38_s21, 2  ;;  %p557_p2 = scmp.lt.s32.totalorder %s3336_s20, 3 }
   0x8   : > { %s4492_s21 = smov (%p39_p1, %s38_s21), 0  ;;  %p558_p3 = pnand %p2676_p0, %p557_p2 }
   0x9   : > { %s2677_s1 = sshll.u32 (!%p558_p3), %s3328_s0, 3  ;;  %s4476_s24 = sld [smem:[#allocation9_spill]] (!%p558_p3) }
   0xa   : > { %561 = sbr.rel (%p558_p3) target bundleno = 1125 (0x465), region = 96  ;;  %p620_p4 = scmp.lt.s32.totalorder (!%p558_p3), %s2677_s1, 15 }
   0xb   : > { %p2681_p5 = scmp.ne.s32.totalorder (!%p558_p3), %s3328_s0, 0 }
   0xf   : > { %s4494_s1 = smov (!%p620_p4, %s2677_s1), 15  ;;  %640 = sbr.rel (%p2681_p5) target bundleno = 26 (0x1a), region = 100 }
  0x10   : > { %s2678_s22 = sshll.u32 %s4494_s1, 3 }
  0x11   : > { %s3478_s25 = scalar_lea.vmem %s4476_s24, %s2678_s22  ;;  %s3483_s27 = scalar_lea.vmem %s4471_s19, %s2678_s22 }
  0x14   : > { %v3354_v0 = vmov 0.0   ;;  %v3355_v1 = vmov -1e+38  }
  0x15   : > { %641 = vst [vmem:[#allocation6] sm:$0xff] %v3354_v0 }
  0x16   : > { %643 = vst [vmem:[#allocation6 + $0x8] sm:$0xff] %v3354_v0 }
  0x17   : > { %646 = vst [vmem:[#allocation7 + $0x40] sm:$0xff] %v3354_v0 }
  0x18   : > { %647 = vst [vmem:[#allocation8 + $0x18] sm:$0xff] %v3354_v0 }
  0x19   : > { %645 = vst [vmem:[#allocation6 + $0x10] sm:$0xff] %v3355_v1 }
  0x1a PF: > { %v3486_v2 = vld [vmem:[%s3478_s25 + $0x18] sm:$0xff]  ;;  %v3489_v3 = vld [vmem:[%s3478_s25] sm:$0xff]  ;;  %v3504_v8 = vld [vmem:[%s3478_s25 + $0x8] sm:$0xff]  ;;  %v3356_v18 = vmov 128.0   ;;  %s4477_s29 = sld [smem:[#allocation10_spill]]  ;;  %s3942_s26 = smov 0  }
  0x1b   : > { %662 = vadd.xlane.f32.xlu1 %v3486_v2  ;;  %656 = vadd.xlane.f32.xlu0 %v3489_v3  ;;  %v690_v4 = vmul.f32 %v3486_v2, %v3486_v2  ;;  %v3496_v5 = vld [vmem:[%s3478_s25 + $0x20] sm:$0xff]  ;;  %v687_v6 = vmul.f32 %v3489_v3, %v3489_v3  ;;  %v688_v9 = vmul.f32 %v3504_v8, %v3504_v8  ;;  %v3509_v10 = vld [vmem:[%s3478_s25 + $0x28] sm:$0xff]  ;;  %v3514_v11 = vld [vmem:[%s3478_s25 + $0x10] sm:$0xff]  ;;  %3184 = vrcp.f32 %v3356_v18  ;;  %s4478_s22 = sld [smem:[#allocation11_spill]] }
  0x1c   : > { %v691_v7 = vmul.f32 %v3496_v5, %v3496_v5  ;;  %v692_v12 = vmul.f32 %v3509_v10, %v3509_v10  ;;  %v689_v13 = vmul.f32 %v3514_v11, %v3514_v11  ;;  %v3522_v14 = vld [vmem:[%s3478_s25 + $0x30] sm:$0xff]  ;;  %v3527_v16 = vld [vmem:[%s3478_s25 + $0x38] sm:$0xff]  ;;  %v2994_v35 = vld [vmem:[%s4460_s8 + $0x28] sm:$0xff] }
  0x1d   : > { %701 = vadd.xlane.f32.xlu2 %v690_v4  ;;  %v693_v15 = vmul.f32 %v3522_v14, %v3522_v14  ;;  %v694_v17 = vmul.f32 %v3527_v16, %v3527_v16  ;;  %v2996_v24 = vld [vmem:[%s4460_s8 + $0x38] sm:$0xff]  ;;  %v2995_v29 = vld [vmem:[%s4460_s8 + $0x30] sm:$0xff]  ;;  %v3010_v36 = vld [vmem:[%s4462_s10 + $0x28] sm:$0xff] }
  0x1e   : > { %v3012_v25 = vld [vmem:[%s4462_s10 + $0x38] sm:$0xff]  ;;  %984 = vmatpush.bf16.msra.mxu0 %v2996_v24  ;;  %3103 = vmatpush.bf16.msra.mxu1 %v2996_v24  ;;  %v3011_v30 = vld [vmem:[%s4462_s10 + $0x30] sm:$0xff]  ;;  %v2993_v42 = vld [vmem:[%s4460_s8 + $0x20] sm:$0xff] }
  0x1f   : > { %1234 = vmatpush.bf16.msra.mxu2 %v3012_v25  ;;  %v3009_v43 = vld [vmem:[%s4462_s10 + $0x20] sm:$0xff]  ;;  %v2992_v52 = vld [vmem:[%s4460_s8 + $0x18] sm:$0xff]  ;;  %v2991_v60 = vld [vmem:[%s4460_s8 + $0x10] sm:$0xff] }
  0x20   : > { %v3008_v53 = vld [vmem:[%s4462_s10 + $0x18] sm:$0xff]  ;;  %v3007_v61 = vld [vmem:[%s4462_s10 + $0x10] sm:$0xff]  ;;  %v2989_v25 = vld [vmem:[%s4460_s8] sm:$0xff] }
  0x21   : > { %v3185_v19 = vpop.eup %3184 }
  0x22   : > { %v673_v20 = vmul.f32 128.0, %v3185_v19  ;;  %vm677_vm0 = vweird.f32 %v3185_v19  ;;  %985 = vmatpush.bf16.msra.mxu0 %v2995_v29  ;;  %3104 = vmatpush.bf16.msra.mxu1 %v2995_v29 }
  0x23   : > { %664 = vadd.xlane.f32.xlu1 %v3496_v5  ;;  %695 = vadd.xlane.f32.xlu0 %v687_v6 }
  0x24   : > { %v674_v21 = vsub.f32 1.0, %v673_v20  ;;  %1235 = vmatpush.bf16.msra.mxu2 %v3011_v30 }
  0x25   : > { %703 = vadd.xlane.f32.xlu2 %v691_v7 }
  0x26   : > { %v675_v22 = vmul.f32 %v3185_v19, %v674_v21  ;;  %986 = vmatpush.bf16.msra.mxu0 %v2994_v35  ;;  %3105 = vmatpush.bf16.msra.mxu1 %v2994_v35 }
  0x28   : > { %v676_v23 = vadd.f32 %v3185_v19, %v675_v22  ;;  %1236 = vmatpush.bf16.msra.mxu2 %v3010_v36 }
  0x2a   : > { %v3539_v26 = vsel %vm677_vm0, %v3185_v19, %v676_v23  ;;  %987 = vmatpush.bf16.msra.mxu0 %v2993_v42  ;;  %3106 = vmatpush.bf16.msra.mxu1 %v2993_v42  ;;  %v3642_v42 = vld [vmem:[%s4477_s29] ss:$0 sm:$0xff] }
  0x2b   : > { %697 = vadd.xlane.f32.xlu1 %v688_v9  ;;  %658 = vadd.xlane.f32.xlu0 %v3504_v8 }
  0x2c   : > { %1237 = vmatpush.bf16.msra.mxu2 %v3009_v43 }
  0x2d   : > { %666 = vadd.xlane.f32.xlu2 %v3509_v10 }
  0x2e   : > { %988 = vmatpush.bf16.msra.mxu0 %v2992_v52  ;;  %3107 = vmatpush.bf16.msra.mxu1 %v2992_v52 }
  0x30   : > { %1238 = vmatpush.bf16.msra.mxu2 %v3008_v53 }
  0x32   : > { %989 = vmatpush.bf16.msra.mxu0 %v2991_v60  ;;  %3108 = vmatpush.bf16.msra.mxu1 %v2991_v60 }
  0x33   : > { %660 = vadd.xlane.f32.xlu1 %v3514_v11  ;;  %705 = vadd.xlane.f32.xlu0 %v692_v12  ;;  %v2990_v12 = vld [vmem:[%s4460_s8 + $0x8] sm:$0xff] }
  0x34   : > { %1239 = vmatpush.bf16.msra.mxu2 %v3007_v61 }
  0x35   : > { %699 = vadd.xlane.f32.xlu2 %v689_v13  ;;  %v3006_v13 = vld [vmem:[%s4462_s10 + $0x8] sm:$0xff] }
  0x36   : > { %990 = vmatpush.bf16.msra.mxu0 %v2990_v12  ;;  %3109 = vmatpush.bf16.msra.mxu1 %v2990_v12 }
  0x38   : > { %1240 = vmatpush.bf16.msra.mxu2 %v3006_v13 }
  0x3a   : > { %991 = vmatpush.bf16.msra.mxu0 %v2989_v25  ;;  %3110 = vmatpush.bf16.msra.mxu1 %v2989_v25 }
  0x3b   : > { %668 = vadd.xlane.f32.xlu0 %v3522_v14  ;;  %707 = vadd.xlane.f32.xlu1 %v693_v15 }
  0x3d   : > { %670 = vadd.xlane.f32.xlu2 %v3527_v16 }
  0x43   : > { %709 = vadd.xlane.f32.xlu0 %v694_v17 }
  0x8e   : > { %v663_v27 = vpop.xlane.xlu1 %662  ;;  %v657_v28 = vpop.xlane.xlu0 %656 }
  0x8f   : > { %v3548_v31 = vmul.f32 %v3539_v26, %v663_v27  ;;  %v3560_v37 = vmul.f32 %v3539_v26, %v657_v28  ;;  %v3005_v27 = vld [vmem:[%s4462_s10] sm:$0xff] }
  0x90   : > { %v702_v32 = vpop.xlane.xlu2 %701  ;;  %1241 = vmatpush.bf16.msra.mxu2 %v3005_v27 }
  0x91   : > { %v722_v33 = vmul.f32 %v3548_v31, %v3548_v31  ;;  %v714_v34 = vmul.f32 %v702_v32, %v3539_v26  ;;  %v719_v44 = vmul.f32 %v3560_v37, %v3560_v37  ;;  %v743_v52 = vsub.f32 %v3489_v3, %v3560_v37 }
  0x93   : > { %v730_v38 = vsub.f32 %v714_v34, %v722_v33 }
  0x95   : > { %v738_v39 = vmax.f32 %v730_v38, 0.0 }
  0x96   : > { %v665_v40 = vpop.xlane.xlu1 %664  ;;  %v696_v41 = vpop.xlane.xlu0 %695 }
  0x97   : > { %v3571_v45 = vmul.f32 %v3539_v26, %v665_v40  ;;  %v711_v46 = vmul.f32 %v696_v41, %v3539_v26  ;;  %v3574_v47 = vadd.f32 1e-05, %v738_v39  ;;  %v746_v41 = vsub.f32 %v3486_v2, %v3548_v31 }
  0x98   : > { %v704_v48 = vpop.xlane.xlu2 %703 }
  0x99   : > { %v723_v49 = vmul.f32 %v3571_v45, %v3571_v45  ;;  %v727_v50 = vsub.f32 %v711_v46, %v719_v44  ;;  %v715_v51 = vmul.f32 %v704_v48, %v3539_v26  ;;  %3186 = vrsqrt.f32 %v3574_v47 }
  0x9a   : > { %vm795_vm2 = vweird.f32 %v3574_v47  ;;  %v747_v12 = vsub.f32 %v3496_v5, %v3571_v45 }
  0x9b   : > { %v735_v54 = vmax.f32 %v727_v50, 0.0  ;;  %v731_v55 = vsub.f32 %v715_v51, %v723_v49  ;;  %v3650_v49 = vld [vmem:[%s4478_s22] ss:$0 sm:$0xff]  ;;  %s4479_s22 = sld [smem:[#allocation12_spill]] }
  0x9d   : > { %v3586_v56 = vadd.f32 1e-05, %v735_v54  ;;  %v739_v57 = vmax.f32 %v731_v55, 0.0 }
  0x9e   : > { %v698_v58 = vpop.xlane.xlu1 %697  ;;  %v659_v59 = vpop.xlane.xlu0 %658 }
  0x9f   : > { %3188 = vrsqrt.f32 %v3586_v56  ;;  %v3595_v62 = vadd.f32 1e-05, %v739_v57  ;;  %v3187_v63 = vpop.eup %3186  ;;  %v712_v0 = vmul.f32 %v698_v58, %v3539_v26  ;;  %v3599_v1 = vmul.f32 %v3539_v26, %v659_v59 }
  0xa0   : > { %v667_v4 = vpop.xlane.xlu2 %666  ;;  %v790_v6 = vmul.f32 %v3187_v63, %v3574_v47  ;;  %vm796_vm1 = vweird.f32 %v3187_v63  ;;  %vm765_vm5 = vweird.f32 %v3586_v56 }
  0xa1   : > { %3190 = vrsqrt.f32 %v3595_v62  ;;  %v720_v7 = vmul.f32 %v3599_v1, %v3599_v1  ;;  %v3606_v9 = vmul.f32 %v3539_v26, %v667_v4  ;;  %vm797_vm3 = vmor %vm795_vm2, %vm796_vm1  ;;  %vm805_vm8 = vweird.f32 %v3595_v62 }
  0xa2   : > { %v791_v15 = vmul.f32 %v3187_v63, %v790_v6 }
  0xa3   : > { %v728_v17 = vsub.f32 %v712_v0, %v720_v7  ;;  %v724_v20 = vmul.f32 %v3606_v9, %v3606_v9 }
  0xa4   : > { %v792_v19 = vmul.f32 0.5, %v791_v15 }
  0xa5   : > { %v3614_v18 = vpop.eup %3188  ;;  %v736_v22 = vmax.f32 %v728_v17, 0.0  ;;  %v3004_v17 = vld [vmem:[%s4461_s9 + $0x38] sm:$0xff] }
  0xa6   : > { %v760_v21 = vmul.f32 %v3614_v18, %v3586_v56  ;;  %v661_v23 = vpop.xlane.xlu1 %660  ;;  %v706_v24 = vpop.xlane.xlu0 %705  ;;  %v793_v29 = vsub.f32 1.5, %v792_v19  ;;  %vm766_vm4 = vweird.f32 %v3614_v18  ;;  %1109 = vmatpush.bf16.msrb.mxu1 %v3004_v17 }
  0xa7   : > { %v3191_v28 = vpop.eup %3190  ;;  %v3627_v30 = vmul.f32 %v3539_v26, %v661_v23  ;;  %v716_v32 = vmul.f32 %v706_v24, %v3539_v26  ;;  %v3632_v35 = vadd.f32 1e-05, %v736_v22  ;;  %vm767_vm7 = vmor %vm765_vm5, %vm766_vm4  ;;  %v3003_v22 = vld [vmem:[%s4461_s9 + $0x30] sm:$0xff] }
  0xa8   : > { %v761_v33 = vmul.f32 %v3614_v18, %v760_v21  ;;  %v800_v34 = vmul.f32 %v3191_v28, %v3595_v62  ;;  %v700_v36 = vpop.xlane.xlu2 %699  ;;  %v794_v38 = vmul.f32 %v3187_v63, %v793_v29  ;;  %vm806_vm6 = vweird.f32 %v3191_v28 }
  0xa9   : > { %v721_v39 = vmul.f32 %v3627_v30, %v3627_v30  ;;  %v732_v40 = vsub.f32 %v716_v32, %v724_v20  ;;  %3192 = vrsqrt.f32 %v3632_v35  ;;  %v713_v48 = vmul.f32 %v700_v36, %v3539_v26  ;;  %vm807_vm9 = vmor %vm805_vm8, %vm806_vm6 }
  0xaa   : > { %v762_v43 = vmul.f32 0.5, %v761_v33  ;;  %v801_v44 = vmul.f32 %v3191_v28, %v800_v34  ;;  %v798_v46 = vsel %vm797_vm3, %v3187_v63, %v794_v38  ;;  %1110 = vmatpush.bf16.msrb.mxu1 %v3003_v22  ;;  %vm775_vm11 = vweird.f32 %v3632_v35 }
  0xab   : > { %v740_v47 = vmax.f32 %v732_v40, 0.0  ;;  %v842_v31 = vmul.f32 %v798_v46, %v746_v41  ;;  %v729_v54 = vsub.f32 %v713_v48, %v721_v39  ;;  %v3703_v48 = vld [vmem:[#allocation7 + $0x40] sm:$0xff] }
  0xac   : > { %v763_v50 = vsub.f32 1.5, %v762_v43  ;;  %v802_v51 = vmul.f32 0.5, %v801_v44 }
  0xad   : > { %v3656_v53 = vadd.f32 1e-05, %v740_v47  ;;  %v854_v55 = vmul.f32 %v3642_v42, %v842_v31  ;;  %v737_v61 = vmax.f32 %v729_v54, 0.0  ;;  %v3002_v31 = vld [vmem:[%s4461_s9 + $0x28] sm:$0xff] }
  0xae   : > { %v764_v57 = vmul.f32 %v3614_v18, %v763_v50  ;;  %v803_v58 = vsub.f32 1.5, %v802_v51  ;;  %v669_v59 = vpop.xlane.xlu0 %668  ;;  %v708_v60 = vpop.xlane.xlu1 %707  ;;  %v744_v50 = vsub.f32 %v3504_v8, %v3599_v1  ;;  %1111 = vmatpush.bf16.msrb.mxu1 %v3002_v31 }
  0xaf   : > { %3194 = vrsqrt.f32 %v3656_v53  ;;  %v3663_v37 = vmul.f32 %v3539_v26, %v669_v59  ;;  %v3193_v56 = vpop.eup %3192  ;;  %v3666_v63 = vadd.f32 %v3650_v49, %v854_v55  ;;  %v717_v6 = vmul.f32 %v708_v60, %v3539_v26  ;;  %v3722_v60 = vld [vmem:[%s4479_s22] ss:$0 sm:$0xff] }
  0xb0   : > { %v768_v0 = vsel %vm767_vm7, %v3614_v18, %v764_v57  ;;  %v804_v4 = vmul.f32 %v3191_v28, %v803_v58  ;;  %v671_v7 = vpop.xlane.xlu2 %670  ;;  %v770_v13 = vmul.f32 %v3193_v56, %v3632_v35  ;;  %v3674_v15 = vadd.f32 1e-05, %v737_v61  ;;  %v3001_v35 = vld [vmem:[%s4461_s9 + $0x20] sm:$0xff] }
  0xb1   : > { %v839_v62 = vmul.f32 %v768_v0, %v743_v52  ;;  %v725_v18 = vmul.f32 %v3663_v37, %v3663_v37  ;;  %v3682_v20 = vmul.f32 %v3539_v26, %v671_v7  ;;  %vm776_vm10 = vweird.f32 %v3193_v56  ;;  %v3735_v7 = vld [vmem:[%s4457_s5] ss:$0 sm:$0xff] }
  0xb2   : > { %v808_v19 = vsel %vm807_vm9, %v3191_v28, %v804_v4  ;;  %v771_v45 = vmul.f32 %v3193_v56, %v770_v13  ;;  %3196 = vrsqrt.f32 %v3674_v15  ;;  %vm777_vm12 = vmor %vm775_vm11, %vm776_vm10  ;;  %vm815_vm14 = vweird.f32 %v3656_v53  ;;  %1112 = vmatpush.bf16.msrb.mxu1 %v3001_v35 }
  0xb3   : > { %v843_v21 = vmul.f32 %v808_v19, %v747_v12  ;;  %v733_v23 = vsub.f32 %v717_v6, %v725_v18  ;;  %v851_v24 = vmul.f32 %v3642_v42, %v839_v62  ;;  %v726_v28 = vmul.f32 %v3682_v20, %v3682_v20  ;;  %v3000_v62 = vld [vmem:[%s4461_s9 + $0x18] sm:$0xff] }
  0xb4   : > { %v772_v27 = vmul.f32 0.5, %v771_v45  ;;  %v748_v12 = vsub.f32 %v3509_v10, %v3606_v9  ;;  %vm785_vm1 = vweird.f32 %v3674_v15 }
  0xb5   : > { %v3195_v25 = vpop.eup %3194  ;;  %v855_v29 = vmul.f32 %v3642_v42, %v843_v21  ;;  %v741_v33 = vmax.f32 %v733_v23, 0.0  ;;  %v3694_v36 = vadd.f32 %v3650_v49, %v851_v24 }
  0xb6   : > { %v810_v32 = vmul.f32 %v3195_v25, %v3656_v53  ;;  %v710_v34 = vpop.xlane.xlu0 %709  ;;  %v773_v38 = vsub.f32 1.5, %v772_v27  ;;  %vm816_vm13 = vweird.f32 %v3195_v25  ;;  %v3747_v53 = vld [vmem:[%s4456_s4] ss:$0 sm:$0xff]  ;;  %v745_v27 = vsub.f32 %v3514_v11, %v3627_v30  ;;  %1113 = vmatpush.bf16.msrb.mxu1 %v3000_v62 }
  0xb7   : > { %v718_v39 = vmul.f32 %v710_v34, %v3539_v26  ;;  %v3698_v40 = vadd.f32 %v3650_v49, %v855_v29  ;;  %v3700_v43 = vadd.f32 1e-05, %v741_v33  ;;  %v3717_v1 = vsub.f32 %v3694_v36, %v3703_v48  ;;  %vm817_vm15 = vmor %vm815_vm14, %vm816_vm13 }
  0xb8   : > { %v811_v41 = vmul.f32 %v3195_v25, %v810_v32  ;;  %v3197_v44 = vpop.eup %3196  ;;  %v774_v46 = vmul.f32 %v3193_v56, %v773_v38  ;;  %v749_v62 = vsub.f32 %v3522_v14, %v3663_v37 }
  0xb9   : > { %v734_v47 = vsub.f32 %v718_v39, %v726_v28  ;;  %v780_v52 = vmul.f32 %v3197_v44, %v3674_v15  ;;  %3198 = vrsqrt.f32 %v3700_v43  ;;  %vm786_vm0 = vweird.f32 %v3197_v44  ;;  %v2999_v15 = vld [vmem:[%s4461_s9 + $0x10] sm:$0xff] }
  0xba   : > { %v812_v51 = vmul.f32 0.5, %v811_v41  ;;  %v778_v54 = vsel %vm777_vm12, %v3193_v56, %v774_v46  ;;  %v3728_v56 = vsub.f32 %v3698_v40, %v3666_v63  ;;  %v900_v18 = vmul.f32 %v3722_v60, %v3717_v1  ;;  %vm787_vm2 = vmor %vm785_vm1, %vm786_vm0  ;;  %1114 = vmatpush.bf16.msrb.mxu1 %v2999_v15 }
  0xbb   : > { %v742_v55 = vmax.f32 %v734_v47, 0.0  ;;  %v840_v57 = vmul.f32 %v778_v54, %v744_v50  ;;  %v781_v59 = vmul.f32 %v3197_v44, %v780_v52  ;;  %vm825_vm4 = vweird.f32 %v3700_v43 }
  0xbc   : > { %v813_v58 = vsub.f32 1.5, %v812_v51  ;;  %v1029_v22 = vmul.f32 %v3747_v53, %v3728_v56  ;;  %v908_v38 = vadd.f32 %v900_v18, %v3703_v48  ;;  %v904_v31 = vmul.f32 %v3722_v60, %v3728_v56 }
  0xbd   : > { %v3724_v61 = vadd.f32 1e-05, %v742_v55  ;;  %v852_v0 = vmul.f32 %v3642_v42, %v840_v57  ;;  %v782_v6 = vmul.f32 0.5, %v781_v59  ;;  %v750_v15 = vsub.f32 %v3527_v16, %v3682_v20 }
  0xbe   : > { %v814_v4 = vmul.f32 %v3195_v25, %v813_v58  ;;  %v3772_v32 = vadd.f32 %v1029_v22, %v3666_v63 }
  0xbf   : > { %3200 = vrsqrt.f32 %v3724_v61  ;;  %v3199_v13 = vpop.eup %3198  ;;  %v3750_v17 = vadd.f32 %v3650_v49, %v852_v0  ;;  %v783_v19 = vsub.f32 1.5, %v782_v6  ;;  %v2998_v0 = vld [vmem:[%s4461_s9 + $0x8] sm:$0xff]  ;;  %vm835_vm7 = vweird.f32 %v3724_v61 }
  0xc0   : > { %v818_v9 = vsel %vm817_vm15, %v3195_v25, %v814_v4  ;;  %v820_v45 = vmul.f32 %v3199_v13, %v3700_v43  ;;  %v1150_v25 = vmul.f32 %v3735_v7, %v3717_v1  ;;  %vm826_vm3 = vweird.f32 %v3199_v13  ;;  %1115 = vmatpush.bf16.msrb.mxu1 %v2998_v0 }
  0xc1   : > { %v844_v21 = vmul.f32 %v818_v9, %v748_v12  ;;  %v784_v23 = vmul.f32 %v3197_v44, %v783_v19  ;;  %v3760_v24 = vsub.f32 %v3750_v17, %v3694_v36  ;;  %vm827_vm5 = vmor %vm825_vm4, %vm826_vm3  ;;  %v912_v19 = vadd.f32 %v904_v31, %v3666_v63 }
  0xc2   : > { %v821_v28 = vmul.f32 %v3199_v13, %v820_v45  ;;  %v1158_v51 = vadd.f32 %v1150_v25, %v3703_v48  ;;  %v2997_v25 = vld [vmem:[%s4461_s9] sm:$0xff] }
  0xc3   : > { %v856_v29 = vmul.f32 %v3642_v42, %v844_v21  ;;  %v788_v33 = vsel %vm787_vm2, %v3197_v44, %v784_v23  ;;  %v901_v34 = vmul.f32 %v3722_v60, %v3760_v24  ;;  %v1151_v30 = vmul.f32 %v3735_v7, %v3760_v24 }
  0xc4   : > { %v841_v41 = vmul.f32 %v788_v33, %v745_v27  ;;  %v822_v46 = vmul.f32 0.5, %v821_v28  ;;  %1116 = vmatpush.bf16.msrb.mxu1 %v2997_v25 }
  0xc5   : > { %v3201_v39 = vpop.eup %3200  ;;  %v3780_v47 = vadd.f32 %v3650_v49, %v856_v29  ;;  %v909_v44 = vadd.f32 %v901_v34, %v3694_v36  ;;  %v1159_v52 = vadd.f32 %v1151_v30, %v3694_v36 }
  0xc6   : > { %v830_v50 = vmul.f32 %v3201_v39, %v3724_v61  ;;  %v823_v54 = vsub.f32 1.5, %v822_v46  ;;  %v853_v35 = vmul.f32 %v3642_v42, %v841_v41  ;;  %vm836_vm6 = vweird.f32 %v3201_v39 }
  0xc7   : > { %v3790_v55 = vsub.f32 %v3780_v47, %v3698_v40  ;;  %v932_v58 = vpack.c.bf16 %v909_v44, %v908_v38  ;;  %v1182_v59 = vpack.c.bf16 %v1159_v52, %v1158_v51  ;;  %vm837_vm8 = vmor %vm835_vm7, %vm836_vm6 }
  0xc8   : > { %v831_v57 = vmul.f32 %v3201_v39, %v830_v50  ;;  %v824_v4 = vmul.f32 %v3199_v13, %v823_v54  ;;  %v3800_v12 = vadd.f32 %v3650_v49, %v853_v35 }
  0xc9   : > { %v905_v6 = vmul.f32 %v3722_v60, %v3790_v55  ;;  %992 = vmatmul.bf16.vlgmr.msra.gmra.mxu0 %v932_v58  ;;  %1242 = vmatmul.bf16.vlgmr.msra.gmra.mxu2 %v1182_v59  ;;  %v1030_v18 = vmul.f32 %v3747_v53, %v3790_v55 }
  0xca   : > { %v832_v9 = vmul.f32 0.5, %v831_v57  ;;  %v828_v21 = vsel %vm827_vm5, %v3199_v13, %v824_v4  ;;  %v3810_v45 = vsub.f32 %v3800_v12, %v3750_v17  ;;  %v3814_v22 = vsub.f32 %v3666_v63, %v3800_v12 }
  0xcb   : > { %v913_v43 = vadd.f32 %v905_v6, %v3698_v40  ;;  %v845_v37 = vmul.f32 %v828_v21, %v749_v62  ;;  %v3820_v13 = vadd.f32 %v1030_v18, %v3698_v40  ;;  %v1155_v18 = vmul.f32 %v3735_v7, %v3790_v55 }
  0xcc   : > { %v833_v23 = vsub.f32 1.5, %v832_v9  ;;  %v902_v33 = vmul.f32 %v3722_v60, %v3810_v45  ;;  %v903_v34 = vmul.f32 %v3722_v60, %v3814_v22  ;;  %v1152_v30 = vmul.f32 %v3735_v7, %v3810_v45 }
  0xcd   : > { %v934_v27 = vpack.c.bf16 %v913_v43, %v912_v19  ;;  %v857_v29 = vmul.f32 %v3642_v42, %v845_v37  ;;  %v1153_v61 = vmul.f32 %v3735_v7, %v3814_v22  ;;  %v1059_v20 = vpack.c.bf16 %v3820_v13, %v3772_v32 }
  0xce   : > { %v834_v28 = vmul.f32 %v3201_v39, %v833_v23  ;;  %v910_v44 = vadd.f32 %v902_v33, %v3750_v17  ;;  %v1160_v51 = vadd.f32 %v1152_v30, %v3750_v17  ;;  %v1154_v21 = vmul.f32 %v3735_v7, %v3728_v56 }
  0xcf   : > { %1002 = vmatmul.bf16.vlgmr.msra.gmra.mxu1 %v934_v27  ;;  %v869_v41 = vadd.f32 %v3650_v49, %v857_v29  ;;  %v1161_v52 = vadd.f32 %v1153_v61, %v3800_v12  ;;  %v1163_v43 = vadd.f32 %v1155_v18, %v3698_v40  ;;  %v1025_v23 = vmul.f32 %v3747_v53, %v3717_v1 }
  0xd0   : > { %v838_v38 = vsel %vm837_vm8, %v3201_v39, %v834_v28  ;;  %v911_v39 = vadd.f32 %v903_v34, %v3800_v12  ;;  %v1162_v37 = vadd.f32 %v1154_v21, %v3666_v63  ;;  %v1028_v63 = vmul.f32 %v3747_v53, %v3814_v22 }
  0xd1   : > { %v846_v46 = vmul.f32 %v838_v38, %v750_v15  ;;  %v894_v31 = vsub.f32 %v869_v41, %v3780_v47  ;;  %v1183_v0 = vpack.c.bf16 %v1161_v52, %v1160_v51  ;;  %v1033_v27 = vadd.f32 %v1025_v23, %v3703_v48 }
  0xd2   : > { %v933_v59 = vpack.c.bf16 %v911_v39, %v910_v44  ;;  %v1184_v25 = vpack.c.bf16 %v1163_v43, %v1162_v37  ;;  %v1036_v48 = vadd.f32 %v1028_v63, %v3800_v12 }
  0xd3   : > { %v858_v50 = vmul.f32 %v3642_v42, %v846_v46  ;;  %v1031_v54 = vmul.f32 %v3747_v53, %v894_v31  ;;  %v906_v32 = vmul.f32 %v3722_v60, %v894_v31  ;;  %v1156_v40 = vmul.f32 %v3735_v7, %v894_v31 }
  0xd5   : > { %v870_v35 = vadd.f32 %v3650_v49, %v858_v50  ;;  %v1039_v57 = vadd.f32 %v1031_v54, %v3780_v47  ;;  %v914_v6 = vadd.f32 %v906_v32, %v3780_v47  ;;  %v1164_v1 = vadd.f32 %v1156_v40, %v3780_v47 }
  0xd7   : > { %v895_v58 = vsub.f32 %v870_v35, %v869_v41  ;;  %887 = vst [vmem:[#allocation7 + $0x40] sm:$0xff] %v870_v35 }
  0xd9   : > { %v907_v42 = vmul.f32 %v3722_v60, %v895_v58  ;;  %v1032_v4 = vmul.f32 %v3747_v53, %v895_v58  ;;  %997 = vmatmul.bf16.gmra.mxu0 %v933_v59  ;;  %1247 = vmatmul.bf16.gmra.mxu2 %v1183_v0  ;;  %v1026_v60 = vmul.f32 %v3747_v53, %v3760_v24 }
  0xda   : > { %v1157_v56 = vmul.f32 %v3735_v7, %v895_v58  ;;  %v1027_v24 = vmul.f32 %v3747_v53, %v3810_v45 }
  0xdb   : > { %v915_v62 = vadd.f32 %v907_v42, %v869_v41  ;;  %v1040_v9 = vadd.f32 %v1032_v4, %v869_v41  ;;  %v1034_v13 = vadd.f32 %v1026_v60, %v3694_v36 }
  0xdc   : > { %v1165_v28 = vadd.f32 %v1157_v56, %v869_v41  ;;  %v1035_v36 = vadd.f32 %v1027_v24, %v3750_v17 }
  0xdd   : > { %v935_v19 = vpack.c.bf16 %v915_v62, %v914_v6  ;;  %v1060_v49 = vpack.c.bf16 %v1040_v9, %v1039_v57  ;;  %v1057_v55 = vpack.c.bf16 %v1034_v13, %v1033_v27 }
  0xde   : > { %v1185_v29 = vpack.c.bf16 %v1165_v28, %v1164_v1  ;;  %v1058_v15 = vpack.c.bf16 %v1036_v48, %v1035_v36 }
  0xdf   : > { %1007 = vmatmul.bf16.gmra.mxu1 %v935_v19 }
  0xe9   : > { %1252 = vmatmul.bf16.gmra.mxu2 %v1184_v25 }
  0xef   : > { %1117 = vmatmul.bf16.vlgmr.msrb.gmra.mxu1 %v1057_v55 }
  0xf9   : > { %1257 = vmatmul.bf16.gmra.mxu2 %v1185_v29 }
  0xff   : > { %1122 = vmatmul.bf16.gmra.mxu1 %v1058_v15 }
 0x10f   : > { %1127 = vmatmul.bf16.gmra.mxu1 %v1059_v20 }
 0x11f   : > { %1132 = vmatmul.bf16.gmra.mxu1 %v1060_v49 }
 0x146   : > { %v993_v7 = vpop.f32.mrf.mxu0 }
 0x147   : > { %1013 = vst [vmem:[#allocation2] sm:$0xff] %v993_v7 }
 0x14c   : > { %v1003_v33 = vpop.f32.mrf.mxu1  ;;  %v1243_v45 = vpop.f32.mrf.mxu2 }
 0x14d   : > { %1017 = vst [vmem:[#allocation2 + $0x20] sm:$0xff] %v1003_v33  ;;  %v2778_v34 = vmul.f32 -1.442695, %v1243_v45 }
 0x14e   : > { %v995_v38 = vpop.f32.mrf.mxu0 }
 0x14f   : > { %3202 = vpow2.f32 %v2778_v34  ;;  %1014 = vst [vmem:[#allocation2 + $0x8] sm:$0xff] %v995_v38 }
 0x154   : > { %v1005_v53 = vpop.f32.mrf.mxu1  ;;  %v1245_v47 = vpop.f32.mrf.mxu2 }
 0x155   : > { %1018 = vst [vmem:[#allocation2 + $0x28] sm:$0xff] %v1005_v53  ;;  %v3203_v17 = vpop.eup %3202  ;;  %v2779_v22 = vmul.f32 -1.442695, %v1245_v47 }
 0x156   : > { %v1287_v12 = vadd.f32 1.0, %v3203_v17  ;;  %v998_v30 = vpop.f32.mrf.mxu0 }
 0x157   : > { %3204 = vpow2.f32 %v2779_v22  ;;  %1015 = vst [vmem:[#allocation2 + $0x10] sm:$0xff] %v998_v30 }
 0x158   : > { %3206 = vrcp.f32 %v1287_v12  ;;  %v1304_v6 = vand.u32 2147483647, %v1287_v12  ;;  %v1306_v62 = vand.u32 2147483648, %v1287_v12  ;;  %vm1300_vm10 = vweird.f32 %v1287_v12 }
 0x15a   : > { %vm1305_vm14 = vcmp.eq.f32.partialorder %v1304_v6, 8.507059e+37  ;;  %v1307_v27 = vor.u32 1.1754944e-38, %v1306_v62 }
 0x15c   : > { %v1008_v61 = vpop.f32.mrf.mxu1  ;;  %v1248_v41 = vpop.f32.mrf.mxu2 }
 0x15d   : > { %1019 = vst [vmem:[#allocation2 + $0x30] sm:$0xff] %v1008_v61  ;;  %v3205_v46 = vpop.eup %3204  ;;  %v2780_v20 = vmul.f32 -1.442695, %v1248_v41 }
 0x15e   : > { %v3207_v31 = vpop.eup %3206  ;;  %v1288_v50 = vadd.f32 1.0, %v3205_v46  ;;  %v1000_v44 = vpop.f32.mrf.mxu0 }
 0x15f   : > { %v1296_v39 = vmul.f32 %v3207_v31, %v1287_v12  ;;  %3208 = vpow2.f32 %v2780_v20  ;;  %1016 = vst [vmem:[#allocation2 + $0x18] sm:$0xff] %v1000_v44  ;;  %vm1301_vm9 = vweird.f32 %v3207_v31 }
 0x160   : > { %3210 = vrcp.f32 %v1288_v50  ;;  %v1321_v9 = vand.u32 2147483648, %v1288_v50  ;;  %v1319_v49 = vand.u32 2147483647, %v1288_v50  ;;  %vm3874_vm12 = vmor %vm1300_vm10, %vm1301_vm9  ;;  %vm1315_vm13 = vweird.f32 %v1288_v50 }
 0x161   : > { %v1297_v51 = vsub.f32 1.0, %v1296_v39 }
 0x162   : > { %v1322_v55 = vor.u32 1.1754944e-38, %v1321_v9  ;;  %vm1320_vm0 = vcmp.eq.f32.partialorder %v1319_v49, 8.507059e+37  ;;  %v3905_v49 = vld [vmem:[#allocation6] sm:$0xff]  }
 0x163   : > { %v1298_v57 = vmul.f32 %v3207_v31, %v1297_v51 }
 0x164   : > { %v1010_v52 = vpop.f32.mrf.mxu1  ;;  %v1250_v54 = vpop.f32.mrf.mxu2 }
 0x165   : > { %1020 = vst [vmem:[#allocation2 + $0x38] sm:$0xff] %v1010_v52  ;;  %v3209_v35 = vpop.eup %3208  ;;  %v2781_v58 = vmul.f32 -1.442695, %v1250_v54  ;;  %v1299_v42 = vadd.f32 %v3207_v31, %v1298_v57 }
 0x166   : > { %v3211_v32 = vpop.eup %3210  ;;  %v3871_v59 = vadd.f32 1.0, %v3209_v35 }
 0x167   : > { %v1311_v0 = vmul.f32 %v3211_v32, %v1288_v50  ;;  %3212 = vpow2.f32 %v2781_v58  ;;  %vm1316_vm11 = vweird.f32 %v3211_v32  ;;  %v1303_v37 = vsel %vm3874_vm12, %v3207_v31, %v1299_v42 }
 0x168   : > { %3214 = vrcp.f32 %v3871_v59  ;;  %vm1317_vm15 = vmor %vm1315_vm13, %vm1316_vm11  ;;  %v1308_v24 = vsel %vm1305_vm14, %v1307_v27, %v1303_v37  ;;  %v1334_v17 = vand.u32 2147483647, %v3871_v59  ;;  %v1336_v22 = vand.u32 2147483648, %v3871_v59  ;;  %v3910_v37 = vld [vmem:[#allocation6 + $0x10] sm:$0xff]  }
 0x169   : > { %v1312_v4 = vsub.f32 1.0, %v1311_v0  ;;  %vm1330_vm2 = vweird.f32 %v3871_v59 }
 0x16a   : > { %vm1335_vm6 = vcmp.eq.f32.partialorder %v1334_v17, 8.507059e+37  ;;  %v1337_v52 = vor.u32 1.1754944e-38, %v1336_v22 }
 0x16b   : > { %v1313_v19 = vmul.f32 %v3211_v32, %v1312_v4 }
 0x16c   : > { %v1118_v18 = vpop.f32.mrf.mxu1  ;;  %v1253_v43 = vpop.f32.mrf.mxu2 }
 0x16d   : > { %1138 = vst [vmem:[#allocation3] sm:$0xff] %v1118_v18  ;;  %v3213_v60 = vpop.eup %3212  ;;  %v1314_v23 = vadd.f32 %v3211_v32, %v1313_v19  ;;  %v2782_v25 = vmul.f32 -1.442695, %v1253_v43  ;;  %v3903_v19 = vld [vmem:[%s4459_s7] ss:$0 sm:$0xff]  ;;  %v3907_v18 = vld [vmem:[#allocation6 + $0x8] sm:$0xff]  }
 0x16e   : > { %v3215_v13 = vpop.eup %3214  ;;  %v1290_v56 = vadd.f32 1.0, %v3213_v60 }
 0x16f   : > { %v1318_v40 = vsel %vm1317_vm15, %v3211_v32, %v1314_v23  ;;  %v1326_v28 = vmul.f32 %v3215_v13, %v3871_v59  ;;  %3216 = vpow2.f32 %v2782_v25  ;;  %vm1331_vm1 = vweird.f32 %v3215_v13  ;;  %v1431_v32 = vld [vmem:[%s4458_s6] sm:$0x1] }
 0x170   : > { %v1323_v63 = vsel %vm1320_vm0, %v1322_v55, %v1318_v40  ;;  %3218 = vrcp.f32 %v1290_v56  ;;  %v1351_v12 = vand.u32 2147483648, %v1290_v56  ;;  %v1349_v61 = vand.u32 2147483647, %v1290_v56  ;;  %vm3887_vm4 = vmor %vm1330_vm2, %vm1331_vm1 }
 0x171   : > { %v3064_v1 = vpack.c.bf16 %v1323_v63, %v1308_v24  ;;  %v1327_v29 = vsub.f32 1.0, %v1326_v28  ;;  %vm1345_vm5 = vweird.f32 %v1290_v56  ;;  %v1432_v6 = vmul.f32 1.442695, %v1431_v32 }
 0x172   : > { %v1352_v54 = vor.u32 1.1754944e-38, %v1351_v12  ;;  %vm1350_vm8 = vcmp.eq.f32.partialorder %v1349_v61, 8.507059e+37 }
 0x173   : > { %3065 = vst [vmem:[#allocation4 + $0x10] sm:$0xff] %v3064_v1   ;;  %v1328_v7 = vmul.f32 %v3215_v13, %v1327_v29 }
 0x174   : > { %v1120_v36 = vpop.f32.mrf.mxu1  ;;  %v1255_v48 = vpop.f32.mrf.mxu2 }
 0x175   : > { %1139 = vst [vmem:[#allocation3 + $0x8] sm:$0xff] %v1120_v36  ;;  %v3217_v15 = vpop.eup %3216  ;;  %v2783_v33 = vmul.f32 -1.442695, %v1255_v48  ;;  %v1329_v53 = vadd.f32 %v3215_v13, %v1328_v7 }
 0x176   : > { %v3219_v45 = vpop.eup %3218  ;;  %v3881_v34 = vadd.f32 1.0, %v3217_v15 }
 0x177   : > { %v1341_v38 = vmul.f32 %v3219_v45, %v1290_v56  ;;  %3220 = vpow2.f32 %v2783_v33  ;;  %vm1346_vm3 = vweird.f32 %v3219_v45  ;;  %v1333_v50 = vsel %vm3887_vm4, %v3215_v13, %v1329_v53 }
 0x178   : > { %3222 = vrcp.f32 %v3881_v34  ;;  %vm1347_vm7 = vmor %vm1345_vm5, %vm1346_vm3  ;;  %v1338_v59 = vsel %vm1335_vm6, %v1337_v52, %v1333_v50  ;;  %vm1360_vm10 = vweird.f32 %v3881_v34  ;;  %v1366_v40 = vand.u32 2147483648, %v3881_v34 }
 0x179   : > { %v1342_v47 = vsub.f32 1.0, %v1341_v38  ;;  %v1364_v63 = vand.u32 2147483647, %v3881_v34 }
 0x17b   : > { %v1343_v30 = vmul.f32 %v3219_v45, %v1342_v47  ;;  %vm1365_vm15 = vcmp.eq.f32.partialorder %v1364_v63, 8.507059e+37 }
 0x17c   : > { %v1123_v41 = vpop.f32.mrf.mxu1  ;;  %v1258_v20 = vpop.f32.mrf.mxu2 }
 0x17d   : > { %1140 = vst [vmem:[#allocation3 + $0x10] sm:$0xff] %v1123_v41  ;;  %v3221_v31 = vpop.eup %3220  ;;  %v1344_v44 = vadd.f32 %v3219_v45, %v1343_v30  ;;  %v2784_v39 = vmul.f32 -1.442695, %v1258_v20 }
 0x17e   : > { %v3893_v51 = vpop.eup %3222  ;;  %v1292_v35 = vadd.f32 1.0, %v3221_v31 }
 0x17f   : > { %v1348_v57 = vsel %vm1347_vm7, %v3219_v45, %v1344_v44  ;;  %v1356_v58 = vmul.f32 %v3893_v51, %v3881_v34  ;;  %3224 = vpow2.f32 %v2784_v39  ;;  %vm1361_vm9 = vweird.f32 %v3893_v51 }
 0x180   : > { %v1353_v0 = vsel %vm1350_vm8, %v1352_v54, %v1348_v57  ;;  %3226 = vrcp.f32 %v1292_v35  ;;  %v1381_v28 = vand.u32 2147483648, %v1292_v35  ;;  %v1379_v29 = vand.u32 2147483647, %v1292_v35  ;;  %vm3920_vm12 = vmor %vm1360_vm10, %vm1361_vm9 }
 0x181   : > { %v3069_v42 = vpack.c.bf16 %v1353_v0, %v1338_v59  ;;  %v1357_v4 = vsub.f32 1.0, %v1356_v58  ;;  %3228 = vpow2.f32 %v1432_v6  ;;  %vm1375_vm13 = vweird.f32 %v1292_v35 }
 0x182   : > { %v1367_v34 = vor.u32 1.1754944e-38, %v1366_v40  ;;  %v1382_v53 = vor.u32 1.1754944e-38, %v1381_v28  ;;  %vm1380_vm0 = vcmp.eq.f32.partialorder %v1379_v29, 8.507059e+37 }
 0x183   : > { %3097 = vst [vmem:[#allocation4] sm:$0xff] %v3069_v42   ;;  %v1358_v43 = vmul.f32 %v3893_v51, %v1357_v4 }
 0x184   : > { %v1125_v62 = vpop.f32.mrf.mxu1  ;;  %v1260_v9 = vpop.f32.mrf.mxu2 }
 0x185   : > { %1141 = vst [vmem:[#allocation3 + $0x18] sm:$0xff] %v1125_v62  ;;  %v3225_v21 = vpop.eup %3224  ;;  %v2785_v60 = vmul.f32 -1.442695, %v1260_v9  ;;  %v1359_v55 = vadd.f32 %v3893_v51, %v1358_v43 }
 0x186   : > { %v3227_v23 = vpop.eup %3226  ;;  %v3912_v25 = vadd.f32 1.0, %v3225_v21 }
 0x187   : > { %v1371_v13 = vmul.f32 %v3227_v23, %v1292_v35  ;;  %3230 = vpow2.f32 %v2785_v60  ;;  %v3229_v27 = vpop.eup %3228  ;;  %vm1376_vm11 = vweird.f32 %v3227_v23  ;;  %v1363_v33 = vsel %vm3920_vm12, %v3893_v51, %v1359_v55 }
 0x188   : > { %3232 = vrcp.f32 %v3912_v25  ;;  %v1434_v24 = vsub.f32 0.0, %v3229_v27  ;;  %vm1377_vm14 = vmor %vm1375_vm13, %vm1376_vm11  ;;  %v1368_v12 = vsel %vm1365_vm15, %v1367_v34, %v1363_v33  ;;  %vm1390_vm2 = vweird.f32 %v3912_v25 }
 0x189   : > { %v1372_v56 = vsub.f32 1.0, %v1371_v13  ;;  %v1396_v51 = vand.u32 2147483648, %v3912_v25  ;;  %v1394_v54 = vand.u32 2147483647, %v3912_v25 }
 0x18a   : > { %v3924_v15 = vperm.slane %v1434_v24, 0 }
 0x18b   : > { %v1373_v1 = vmul.f32 %v3227_v23, %v1372_v56  ;;  %v1397_v0 = vor.u32 1.1754944e-38, %v1396_v51  ;;  %vm1395_vm7 = vcmp.eq.f32.partialorder %v1394_v54, 8.507059e+37 }
 0x18c   : > { %v1128_v36 = vpop.f32.mrf.mxu1 }
 0x18d   : > { %1142 = vst [vmem:[#allocation3 + $0x20] sm:$0xff] %v1128_v36  ;;  %v3231_v7 = vpop.eup %3230  ;;  %v1374_v45 = vadd.f32 %v3227_v23, %v1373_v1 }
 0x18e   : > { %v3233_v38 = vpop.eup %3232  ;;  %v1294_v47 = vadd.f32 1.0, %v3231_v7 }
 0x18f   : > { %v1378_v17 = vsel %vm1377_vm14, %v3227_v23, %v1374_v45  ;;  %v1386_v22 = vmul.f32 %v3233_v38, %v3912_v25  ;;  %vm1391_vm1 = vweird.f32 %v3233_v38 }
 0x190   : > { %v1383_v30 = vsel %vm1380_vm0, %v1382_v53, %v1378_v17  ;;  %3234 = vrcp.f32 %v1294_v47  ;;  %v1411_v52 = vand.u32 2147483648, %v1294_v47  ;;  %v1409_v57 = vand.u32 2147483647, %v1294_v47  ;;  %vm1392_vm4 = vmor %vm1390_vm2, %vm1391_vm1 }
 0x191   : > { %v3074_v61 = vpack.c.bf16 %v1383_v30, %v1368_v12  ;;  %v1387_v41 = vsub.f32 1.0, %v1386_v22  ;;  %vm1405_vm5 = vweird.f32 %v1294_v47 }
 0x192   : > { %v1412_v42 = vor.u32 1.1754944e-38, %v1411_v52  ;;  %vm1410_vm8 = vcmp.eq.f32.partialorder %v1409_v57, 8.507059e+37 }
 0x193   : > { %3098 = vst [vmem:[#allocation4 + $0x18] sm:$0xff] %v3074_v61   ;;  %v1388_v20 = vmul.f32 %v3233_v38, %v1387_v41 }
 0x194   : > { %v1130_v46 = vpop.f32.mrf.mxu1 }
 0x195   : > { %1143 = vst [vmem:[#allocation3 + $0x28] sm:$0xff] %v1130_v46  ;;  %v1389_v44 = vadd.f32 %v3233_v38, %v1388_v20 }
 0x196   : > { %v3235_v31 = vpop.eup %3234 }
 0x197   : > { %v1401_v50 = vmul.f32 %v3235_v31, %v1294_v47  ;;  %vm1406_vm3 = vweird.f32 %v3235_v31  ;;  %v1393_v32 = vsel %vm1392_vm4, %v3233_v38, %v1389_v44 }
 0x198   : > { %vm1407_vm6 = vmor %vm1405_vm5, %vm1406_vm3  ;;  %v1398_v6 = vsel %vm1395_vm7, %v1397_v0, %v1393_v32 }
 0x199   : > { %v1402_v39 = vsub.f32 1.0, %v1401_v50 }
 0x19b   : > { %v1403_v35 = vmul.f32 %v3235_v31, %v1402_v39 }
 0x19c   : > { %v1133_v58 = vpop.f32.mrf.mxu1 }
 0x19d   : > { %1144 = vst [vmem:[#allocation3 + $0x30] sm:$0xff] %v1133_v58  ;;  %v1404_v59 = vadd.f32 %v3235_v31, %v1403_v35 }
 0x19f   : > { %v1408_v4 = vsel %vm1407_vm6, %v3235_v31, %v1404_v59 }
 0x1a0   : > { %v1413_v62 = vsel %vm1410_vm8, %v1412_v42, %v1408_v4 }
 0x1a1   : > { %v3079_v9 = vpack.c.bf16 %v1413_v62, %v1398_v6 }
 0x1a3   : > { %3099 = vst [vmem:[#allocation4 + $0x8] sm:$0xff] %v3079_v9  }
 0x1a4   : > { %v1135_v21 = vpop.f32.mrf.mxu1 }
 0x1a5   : > { %1145 = vst [vmem:[#allocation3 + $0x38] sm:$0xff] %v1135_v21 }
 0x1a6 LB: >> { %s3951_s28 = sshll.u32 %s3352_s26, 3  ;;  %v1491_v43 = vadd.f32 %v3340_v37, %v3924_v15  ;;  %s1452_s26 = sadd.s32 1, %s3352_s26   ;;  %s3352_s26 = sphi %s3942_s26, %s1452_s26   ;;  %v3348_v49 = vphi %v3905_v49, %v4488_v49   ;;  %v3344_v18 = vphi %v3907_v18, %v4487_v18   ;;  %v3340_v37 = vphi %v3910_v37, %v4486_v37  }
 0x1a7   : >> { %s1457_s29 = scalar_lea.vmem [#allocation2], %s3951_s28  ;;  %s1459_s0 = scalar_lea.vmem [#allocation3], %s3951_s28 }
 0x1a8   : >> { %v1458_v60 = vld [vmem:[%s1457_s29] sm:$0xff]  ;;  %s1489_s1 = scalar_lea.vmem [#allocation5], %s3951_s28  ;;  %p1449_p6 = scmp.ge.s32.totalorder %s1452_s26, 8  }
 0x1a9   : >> { %v1461_v23 = vadd.f32 %v3903_v19, %v1458_v60  ;;  %v1492_v25 = vmax.f32 %v1491_v43, %v1458_v60   ;;  %v3019_v54 = vld [vmem:[%s4463_s11 + $0x30] sm:$0xff] (%p1449_p6)  ;;  %v3018_v35 = vld [vmem:[%s4463_s11 + $0x28] sm:$0xff] (%p1449_p6)  ;;  %v3017_v19 = vld [vmem:[%s4463_s11 + $0x20] sm:$0xff] (%p1449_p6) }
 0x1aa   : > { %v3016_v15 = vld [vmem:[%s4463_s11 + $0x18] sm:$0xff] (%p1449_p6)  ;;  %v3015_v57 = vld [vmem:[%s4463_s11 + $0x10] sm:$0xff] (%p1449_p6)  ;;  %v3014_v0 = vld [vmem:[%s4463_s11 + $0x8] sm:$0xff] (%p1449_p6) }
 0x1ab   : >> { %v1462_v13 = vmax.f32 %v3340_v37, %v1461_v23  ;;  %v1493_v27 = vsub.f32 %v1491_v43, %v1492_v25  ;;  %v1496_v55 = vsub.f32 %v1458_v60, %v1492_v25  ;;  %1506 = vst [vmem:[#allocation6 + $0x10] sm:$0xff] (%p1449_p6), %v1492_v25  ;;  %v3082_v58 = vld [vmem:[#allocation4 + $0x10] sm:$0xff] (%p1449_p6)   ;;  %v3013_v9 = vld [vmem:[%s4463_s11] sm:$0xff] (%p1449_p6) }
 0x1ac   : >> { %v1460_v48 = vld [vmem:[%s1459_s0] sm:$0xff]  ;;  %v3083_v32 = vunpack.c.l.bf16 (%p1449_p6), %v3082_v58  ;;  %v3084_v59 = vunpack.c.h.bf16 (%p1449_p6), %v3082_v58  ;;  %v2919_v58 = vld [vmem:[%s4468_s16 + $0x78] sm:$0xf0] (%p1449_p6) }
 0x1ad   : >> { %v1463_v56 = vsub.f32 %v3340_v37, %v1462_v13  ;;  %v1466_v40 = vsub.f32 %v1461_v23, %v1462_v13  ;;  %v1494_v28 = vmul.f32 1.442695, %v1493_v27  ;;  %v1497_v24 = vmul.f32 1.442695, %v1496_v55  ;;  %v3100_v43 = vld [vmem:[#allocation4] sm:$0xff] (%p1449_p6)  }
 0x1ae   : > { %v3087_v60 = vunpack.c.l.bf16 (%p1449_p6), %v3100_v43  ;;  %v3088_v23 = vunpack.c.h.bf16 (%p1449_p6), %v3100_v43  ;;  %v2901_v43 = vld [vmem:[%s4468_s16 + $0x50] sm:$0xf] (%p1449_p6) }
 0x1af   : >> { %v1464_v63 = vmul.f32 1.442695, %v1463_v56  ;;  %v1467_v1 = vmul.f32 1.442695, %v1466_v40  ;;  %3236 = vpow2.f32 %v1494_v28  ;;  %v3101_v40 = vld [vmem:[#allocation4 + $0x18] sm:$0xff] (%p1449_p6)  }
 0x1b0   : >> { %3238 = vpow2.f32 %v1497_v24  ;;  %v3091_v28 = vunpack.c.l.bf16 (%p1449_p6), %v3101_v40  ;;  %v3092_v24 = vunpack.c.h.bf16 (%p1449_p6), %v3101_v40  ;;  %v2893_v40 = vld [vmem:[%s4468_s16 + $0x40] sm:$0xf] (%p1449_p6) }
 0x1b1   : >> { %3240 = vpow2.f32 %v1464_v63 }
 0x1b2   : >> { %3242 = vpow2.f32 %v1467_v1 }
 0x1b5   : >> { %v3237_v29 = vpop.eup %3236 }
 0x1b6   : >> { %v3239_v36 = vpop.eup %3238  ;;  %v1499_v7 = vmul.f32 %v3348_v49, %v3237_v29  ;;  %v1502_v33 = vmul.f32 %v3344_v18, %v3237_v29 }
 0x1b7   : >> { %v3241_v45 = vpop.eup %3240  ;;  %v1500_v38 = vmul.f32 %v3239_v36, %v1460_v48 }
 0x1b8   : >> { %v3243_v34 = vpop.eup %3242  ;;  %v1472_v53 = vmul.f32 %v3344_v18, %v3241_v45  ;;  %v1503_v47 = vadd.f32 %v3239_v36, %v1502_v33   ;;  %v1469_v30 = vmul.f32 %v3348_v49, %v3241_v45 }
 0x1b9   : >> { %v1501_v17 = vadd.f32 %v1500_v38, %v1499_v7   ;;  %v1470_v61 = vmul.f32 %v3243_v34, %v1460_v48  ;;  %v3102_v7 = vld [vmem:[#allocation4 + $0x8] sm:$0xff] (%p1449_p6)  }
 0x1ba   : >> { %v1473_v37 = vadd.f32 %v3243_v34, %v1472_v53  ;;  %1505 = vst [vmem:[#allocation6 + $0x8] sm:$0xff] (%p1449_p6), %v1503_v47  ;;  %v3095_v33 = vunpack.c.l.bf16 (%p1449_p6), %v3102_v7  ;;  %v3096_v45 = vunpack.c.h.bf16 (%p1449_p6), %v3102_v7 }
 0x1bb   : >> { %v1471_v44 = vadd.f32 %v1470_v61, %v1469_v30  ;;  %v4488_v49 = vmov %v1501_v17  ;;  %1504 = vst [vmem:[#allocation6] sm:$0xff] (%p1449_p6), %v1501_v17 }
 0x1bc   : >> { %3244 = vrcp.f32 %v1473_v37  ;;  %v1485_v41 = vand.u32 2147483648, %v1473_v37  ;;  %vm1479_vm9 = vweird.f32 %v1473_v37  ;;  %v1483_v20 = vand.u32 2147483647, %v1473_v37  ;;  %v3020_v49 = vld [vmem:[%s4463_s11 + $0x38] sm:$0xff] (%p1449_p6) }
 0x1bd   : > { %1607 = vmatpush.bf16.msra.mxu3 (%p1449_p6), %v3020_v49 }
 0x1be   : >> { %v1486_v50 = vor.u32 1.1754944e-38, %v1485_v41  ;;  %vm1484_vm12 = vcmp.eq.f32.partialorder %v1483_v20, 8.507059e+37 }
 0x1c1   : > { %1608 = vmatpush.bf16.msra.mxu3 (%p1449_p6), %v3019_v54 }
 0x1c2   : >> { %v3245_v22 = vpop.eup %3244 }
 0x1c3   : >> { %v1475_v12 = vmul.f32 %v3245_v22, %v1473_v37  ;;  %vm1480_vm10 = vweird.f32 %v3245_v22  ;;  %v4486_v37 = vmov %v1492_v25 }
 0x1c4   : >> { %vm1481_vm11 = vmor %vm1479_vm9, %vm1480_vm10 }
 0x1c5   : >> { %v1476_v46 = vsub.f32 1.0, %v1475_v12  ;;  %1609 = vmatpush.bf16.msra.mxu3 (%p1449_p6), %v3018_v35 }
 0x1c7   : >> { %v1477_v31 = vmul.f32 %v3245_v22, %v1476_v46 }
 0x1c9   : >> { %v1478_v39 = vadd.f32 %v3245_v22, %v1477_v31  ;;  %1610 = vmatpush.bf16.msra.mxu3 (%p1449_p6), %v3017_v19  ;;  %v3044_v19 = vld [vmem:[%s4468_s16 + $0x74] sm:$0xf0] (%p1449_p6) }
 0x1cb   : >> { %v1482_v18 = vsel %vm1481_vm11, %v3245_v22, %v1478_v39  ;;  %1451 = sbr.rel (!%p1449_p6) target bundleno = 422 (0x1a6), region = 144 }
 0x1cc   : >> { %v1487_v51 = vsel %vm1484_vm12, %v1486_v50, %v1482_v18  ;;  %v4487_v18 = vmov %v1503_v47 }
 0x1cd   : >> { %v1488_v52 = vmul.f32 %v1487_v51, %v1471_v44  ;;  %1611 = vmatpush.bf16.msra.mxu3 (%p1449_p6), %v3016_v15  ;;  %v3043_v15 = vld [vmem:[%s4468_s16 + $0x74] sm:$0xf] (%p1449_p6) }
 0x1cf   : >> { %1490 = vst [vmem:[%s1489_s1] sm:$0xff] %v1488_v52 }
 0x1d1   : > { %1612 = vmatpush.bf16.msra.mxu3 %v3015_v57 }
 0x1d5   : > { %1613 = vmatpush.bf16.msra.mxu3 %v3014_v0  ;;  %v3042_v0 = vld [vmem:[%s4468_s16 + $0x64] sm:$0xf0] }
 0x1d6   : > { %v1523_v42 = vld [vmem:[#allocation5] sm:$0xff]  ;;  %v1524_v4 = vld [vmem:[#allocation5 + $0x8] sm:$0xff]  ;;  %v1525_v25 = vld [vmem:[#allocation5 + $0x10] sm:$0xff] }
 0x1d7   : > { %v1531_v6 = vmul.f32 %v3083_v32, %v1523_v42  ;;  %v1532_v62 = vmul.f32 %v3084_v59, %v1524_v4  ;;  %v1526_v13 = vld [vmem:[#allocation5 + $0x18] sm:$0xff]  ;;  %v1533_v27 = vmul.f32 %v3087_v60, %v1525_v25  ;;  %v1527_v63 = vld [vmem:[#allocation5 + $0x20] sm:$0xff]  ;;  %v1528_v1 = vld [vmem:[#allocation5 + $0x28] sm:$0xff]  ;;  %v2922_v32 = vor.u32 %v3043_v15, %v2919_v58 }
 0x1d8   : > { %v1534_v55 = vmul.f32 %v3088_v23, %v1526_v13  ;;  %v1535_v29 = vmul.f32 %v3091_v28, %v1527_v63  ;;  %v1536_v36 = vmul.f32 %v3092_v24, %v1528_v1  ;;  %v1529_v38 = vld [vmem:[#allocation5 + $0x30] sm:$0xff]  ;;  %v1530_v34 = vld [vmem:[#allocation5 + $0x38] sm:$0xff]  ;;  %v2909_v59 = vld [vmem:[%s4468_s16 + $0x60] sm:$0xf] }
 0x1d9   : > { %v1555_v21 = vpack.c.bf16 %v1532_v62, %v1531_v6  ;;  %1614 = vmatpush.bf16.msra.mxu3 %v3013_v9  ;;  %v1537_v53 = vmul.f32 %v3095_v33, %v1529_v38  ;;  %v1538_v47 = vmul.f32 %v3096_v45, %v1530_v34  ;;  %2295 = vmatpush.bf16.msrb.mxu2 %v2922_v32  ;;  %v3041_v42 = vld [vmem:[%s4468_s16 + $0x64] sm:$0xf]  ;;  %v3027_v4 = vld [vmem:[%s4470_s18 + $0x30] sm:$0xff]  ;;  %v2911_v62 = vld [vmem:[%s4468_s16 + $0x68] sm:$0xf0] }
 0x1da   : > { %v1556_v56 = vpack.c.bf16 %v1534_v55, %v1533_v27  ;;  %v1557_v48 = vpack.c.bf16 %v1536_v36, %v1535_v29  ;;  %v2910_v6 = vor.u32 %v3042_v0, %v2909_v59  ;;  %v2914_v9 = vor.u32 %v3041_v42, %v2911_v62  ;;  %v3040_v60 = vld [vmem:[%s4468_s16 + $0x54] sm:$0xf0]  ;;  %v3039_v23 = vld [vmem:[%s4468_s16 + $0x54] sm:$0xf]  ;;  %v3026_v25 = vld [vmem:[%s4470_s18 + $0x28] sm:$0xff] }
 0x1db   : > { %v1558_v17 = vpack.c.bf16 %v1538_v47, %v1537_v53  ;;  %v2902_v13 = vor.u32 %v3040_v60, %v2901_v43  ;;  %v2903_v27 = vld [vmem:[%s4468_s16 + $0x58] sm:$0xf0]  ;;  %v3038_v28 = vld [vmem:[%s4468_s16 + $0x44] sm:$0xf0]  ;;  %v3037_v24 = vld [vmem:[%s4468_s16 + $0x44] sm:$0xf] }
 0x1dc   : > { %1615 = vmatmul.bf16.vlgmr.msra.gmra.mxu3 %v1555_v21  ;;  %v2906_v55 = vor.u32 %v3039_v23, %v2903_v27  ;;  %v3025_v63 = vld [vmem:[%s4470_s18 + $0x20] sm:$0xff]  ;;  %v2894_v1 = vor.u32 %v3038_v28, %v2893_v40  ;;  %v2895_v29 = vld [vmem:[%s4468_s16 + $0x48] sm:$0xf0]  ;;  %v2885_v38 = vld [vmem:[%s4468_s16 + $0x30] sm:$0xf] }
 0x1dd   : > { %2296 = vmatpush.bf16.msrb.mxu2 %v2914_v9  ;;  %v2898_v36 = vor.u32 %v3037_v24, %v2895_v29  ;;  %v3036_v34 = vld [vmem:[%s4468_s16 + $0x34] sm:$0xf0]  ;;  %v3035_v53 = vld [vmem:[%s4468_s16 + $0x34] sm:$0xf]  ;;  %v2871_v32 = vld [vmem:[%s4468_s16 + $0x18] sm:$0xf0] }
 0x1de   : > { %v3024_v47 = vld [vmem:[%s4470_s18 + $0x18] sm:$0xff]  ;;  %v3030_v62 = vld [vmem:[%s4468_s16 + $0x4] sm:$0xf0]  ;;  %v3021_v9 = vld [vmem:[%s4470_s18] sm:$0xff] }
 0x1df   : > { %v3032_v15 = vld [vmem:[%s4468_s16 + $0x14] sm:$0xf0]  ;;  %v3029_v43 = vld [vmem:[%s4468_s16 + $0x4] sm:$0xf]  ;;  %v2863_v60 = vld [vmem:[%s4468_s16 + $0x8] sm:$0xf0] }
 0x1e0   : > { %v2866_v27 = vor.u32 %v3029_v43, %v2863_v60 }
 0x1e1   : > { %2297 = vmatpush.bf16.msrb.mxu2 %v2906_v55 }
 0x1e5   : > { %2298 = vmatpush.bf16.msrb.mxu2 %v2898_v36 }
 0x1ec   : > { %1620 = vmatmul.bf16.gmra.mxu3 %v1556_v56 }
 0x1fc   : > { %1625 = vmatmul.bf16.gmra.mxu3 %v1557_v48 }
 0x20c   : > { %1630 = vmatmul.bf16.gmra.mxu3 %v1558_v17  ;;  %v2886_v17 = vor.u32 %v3036_v34, %v2885_v38 }
 0x25f   : > { %v1616_v37 = vpop.f32.mrf.mxu3 }
 0x260   : > { %v3992_v22 = vadd.f32 %v1616_v37, %v3489_v3  ;;  %v2887_v37 = vld [vmem:[%s4468_s16 + $0x38] sm:$0xf0] }
 0x262   : > { %1644 = vadd.xlane.f32.xlu0 %v3992_v22  ;;  %v1668_v61 = vmul.f32 %v3992_v22, %v3992_v22 }
 0x267   : > { %v1618_v12 = vpop.f32.mrf.mxu3 }
 0x268   : > { %v3996_v30 = vadd.f32 %v1618_v12, %v3504_v8 }
 0x26a   : > { %1676 = vadd.xlane.f32.xlu0 %v1668_v61  ;;  %1646 = vadd.xlane.f32.xlu1 %v3996_v30  ;;  %v1669_v3 = vmul.f32 %v3996_v30, %v3996_v30  ;;  %v2890_v61 = vor.u32 %v3035_v53, %v2887_v37 }
 0x26c   : > { %2299 = vmatpush.bf16.msrb.mxu2 %v2890_v61 }
 0x26f   : > { %v1621_v41 = vpop.f32.mrf.mxu3 }
 0x270   : > { %v4002_v46 = vadd.f32 %v1621_v41, %v3514_v11 }
 0x272   : > { %1678 = vadd.xlane.f32.xlu1 %v1669_v3  ;;  %1648 = vadd.xlane.f32.xlu2 %v4002_v46  ;;  %v1670_v8 = vmul.f32 %v4002_v46, %v4002_v46 }
 0x277   : > { %v1623_v20 = vpop.f32.mrf.mxu3 }
 0x278   : > { %v4010_v31 = vadd.f32 %v1623_v20, %v3486_v2  ;;  %v3034_v20 = vld [vmem:[%s4468_s16 + $0x24] sm:$0xf0] }
 0x27a   : > { %1680 = vadd.xlane.f32.xlu2 %v1670_v8  ;;  %1650 = vadd.xlane.f32.xlu0 %v4010_v31  ;;  %v1671_v11 = vmul.f32 %v4010_v31, %v4010_v31  ;;  %v2877_v8 = vld [vmem:[%s4468_s16 + $0x20] sm:$0xf] }
 0x27c   : > { %1682 = vadd.xlane.f32.xlu1 %v1671_v11  ;;  %v3023_v11 = vld [vmem:[%s4470_s18 + $0x10] sm:$0xff] }
 0x27f   : > { %v1626_v50 = vpop.f32.mrf.mxu3 }
 0x280   : > { %v4016_v44 = vadd.f32 %v1626_v50, %v3496_v5  ;;  %v2878_v50 = vor.u32 %v3034_v20, %v2877_v8 }
 0x282   : > { %1652 = vadd.xlane.f32.xlu2 %v4016_v44  ;;  %v1672_v39 = vmul.f32 %v4016_v44, %v4016_v44 }
 0x284   : > { %1684 = vadd.xlane.f32.xlu0 %v1672_v39  ;;  %v3033_v39 = vld [vmem:[%s4468_s16 + $0x24] sm:$0xf] }
 0x287   : > { %v1628_v18 = vpop.f32.mrf.mxu3 }
 0x288   : > { %v4022_v2 = vadd.f32 %v1628_v18, %v3509_v10  ;;  %v2879_v18 = vld [vmem:[%s4468_s16 + $0x28] sm:$0xf0] }
 0x28a   : > { %1654 = vadd.xlane.f32.xlu1 %v4022_v2  ;;  %v1673_v51 = vmul.f32 %v4022_v2, %v4022_v2 }
 0x28c   : > { %1686 = vadd.xlane.f32.xlu2 %v1673_v51 }
 0x28f   : > { %v1631_v52 = vpop.f32.mrf.mxu3 }
 0x290   : > { %v4028_v5 = vadd.f32 %v1631_v52, %v3522_v14  ;;  %v2917_v14 = vld [vmem:[%s4468_s16 + $0x70] sm:$0xf]  ;;  %v2882_v52 = vor.u32 %v3033_v39, %v2879_v18 }
 0x291   : > { %v2918_v57 = vor.u32 %v3044_v19, %v2917_v14  ;;  %v2869_v19 = vld [vmem:[%s4468_s16 + $0x10] sm:$0xf] }
 0x292   : > { %1656 = vadd.xlane.f32.xlu0 %v4028_v5  ;;  %v1674_v49 = vmul.f32 %v4028_v5, %v4028_v5  ;;  %2300 = vmatpush.bf16.msrb.mxu2 %v2882_v52  ;;  %v2870_v58 = vor.u32 %v3032_v15, %v2869_v19  ;;  %v4204_v52 = vld [vmem:[%s4465_s13] ss:$0 sm:$0xff] }
 0x293   : > { %2266 = vmatpush.bf16.msra.mxu1 %v2918_v57  ;;  %v3022_v57 = vld [vmem:[%s4470_s18 + $0x8] sm:$0xff] }
 0x294   : > { %1688 = vadd.xlane.f32.xlu1 %v1674_v49 }
 0x297   : > { %v1633_v54 = vpop.f32.mrf.mxu3  ;;  %2267 = vmatpush.bf16.msra.mxu1 %v2910_v6  ;;  %v2861_v6 = vld [vmem:[%s4468_s16] sm:$0xf] }
 0x298   : > { %v4034_v10 = vadd.f32 %v1633_v54, %v3527_v16  ;;  %v3028_v16 = vld [vmem:[%s4470_s18 + $0x38] sm:$0xff] }
 0x299   : > { %1965 = vmatpush.bf16.msrb.mxu0 %v3028_v16  ;;  %v3031_v16 = vld [vmem:[%s4468_s16 + $0x14] sm:$0xf] }
 0x29a   : > { %1658 = vadd.xlane.f32.xlu2 %v4034_v10  ;;  %v1675_v35 = vmul.f32 %v4034_v10, %v4034_v10  ;;  %v2874_v0 = vor.u32 %v3031_v16, %v2871_v32 }
 0x29b   : > { %2268 = vmatpush.bf16.msra.mxu1 %v2902_v13 }
 0x29c   : > { %1690 = vadd.xlane.f32.xlu0 %v1675_v35  ;;  %2301 = vmatpush.bf16.msrb.mxu2 %v2874_v0 }
 0x29d   : > { %1966 = vmatpush.bf16.msrb.mxu0 %v3027_v4 }
 0x29f   : > { %2269 = vmatpush.bf16.msra.mxu1 %v2894_v1 }
 0x2a0   : > { %2302 = vmatpush.bf16.msrb.mxu2 %v2866_v27 }
 0x2a1   : > { %1967 = vmatpush.bf16.msrb.mxu0 %v3026_v25 }
 0x2a3   : > { %2270 = vmatpush.bf16.msra.mxu1 %v2886_v17 }
 0x2a5   : > { %1968 = vmatpush.bf16.msrb.mxu0 %v3025_v63 }
 0x2a7   : > { %2271 = vmatpush.bf16.msra.mxu1 %v2878_v50 }
 0x2a9   : > { %1969 = vmatpush.bf16.msrb.mxu0 %v3024_v47 }
 0x2ab   : > { %2272 = vmatpush.bf16.msra.mxu1 %v2870_v58 }
 0x2ad   : > { %1970 = vmatpush.bf16.msrb.mxu0 %v3023_v11  ;;  %v4196_v11 = vld [vmem:[%s4464_s12] ss:$0 sm:$0xff] }
 0x2b1   : > { %1971 = vmatpush.bf16.msrb.mxu0 %v3022_v57 }
 0x2b5   : > { %1972 = vmatpush.bf16.msrb.mxu0 %v3021_v9 }
 0x2d5   : > { %v1645_v21 = vpop.xlane.xlu0 %1644 }
 0x2d6   : > { %v4085_v56 = vmul.f32 %v1645_v21, %v3539_v26  ;;  %v2862_v21 = vor.u32 %v3030_v62, %v2861_v6 }
 0x2d8   : > { %v1700_v33 = vmul.f32 %v4085_v56, %v4085_v56  ;;  %2273 = vmatpush.bf16.msra.mxu1 %v2862_v21 }
 0x2dd   : > { %v1677_v48 = vpop.xlane.xlu0 %1676  ;;  %v1647_v7 = vpop.xlane.xlu1 %1646 }
 0x2de   : > { %v1692_v45 = vmul.f32 %v1677_v48, %v3539_v26  ;;  %v4121_v3 = vmul.f32 %v1647_v7, %v3539_v26 }
 0x2e0   : > { %v1708_v12 = vsub.f32 %v1692_v45, %v1700_v33  ;;  %v1701_v35 = vmul.f32 %v4121_v3, %v4121_v3 }
 0x2e2   : > { %v1716_v41 = vmax.f32 %v1708_v12, 0.0 }
 0x2e4   : > { %v1732_v51 = vadd.f32 1e-05, %v1716_v41  ;;  %v1724_v41 = vsub.f32 %v3992_v22, %v4085_v56 }
 0x2e5   : > { %v1679_v49 = vpop.xlane.xlu1 %1678  ;;  %v1649_v54 = vpop.xlane.xlu2 %1648 }
 0x2e6   : > { %3250 = vrsqrt.f32 %v1732_v51  ;;  %v1693_v14 = vmul.f32 %v1679_v49, %v3539_v26  ;;  %v4157_v4 = vmul.f32 %v1649_v54, %v3539_v26  ;;  %vm1746_vm14 = vweird.f32 %v1732_v51 }
 0x2e8   : > { %v1709_v59 = vsub.f32 %v1693_v14, %v1701_v35  ;;  %v1702_v13 = vmul.f32 %v4157_v4, %v4157_v4 }
 0x2ea   : > { %v1717_v42 = vmax.f32 %v1709_v59, 0.0 }
 0x2ec   : > { %v3251_v23 = vpop.eup %3250  ;;  %v1733_v25 = vadd.f32 1e-05, %v1717_v42  ;;  %v1725_v42 = vsub.f32 %v3996_v30, %v4121_v3  ;;  %v1860_v3 = vld [vmem:[#allocation8 + $0x18] sm:$0xff] }
 0x2ed   : > { %v1741_v55 = vmul.f32 %v3251_v23, %v1732_v51  ;;  %v1681_v40 = vpop.xlane.xlu2 %1680  ;;  %v1651_v28 = vpop.xlane.xlu0 %1650  ;;  %vm1747_vm13 = vweird.f32 %v3251_v23 }
 0x2ee   : > { %3252 = vrsqrt.f32 %v1733_v25  ;;  %v1694_v24 = vmul.f32 %v1681_v40, %v3539_v26  ;;  %v4178_v63 = vmul.f32 %v1651_v28, %v3539_v26  ;;  %vm1748_vm15 = vmor %vm1746_vm14, %vm1747_vm13  ;;  %vm1756_vm1 = vweird.f32 %v1733_v25 }
 0x2ef   : > { %v1742_v1 = vmul.f32 %v3251_v23, %v1741_v55  ;;  %v1683_v29 = vpop.xlane.xlu1 %1682 }
 0x2f0   : > { %v1710_v36 = vsub.f32 %v1694_v24, %v1702_v13  ;;  %v1703_v48 = vmul.f32 %v4178_v63, %v4178_v63  ;;  %v1695_v7 = vmul.f32 %v1683_v29, %v3539_v26 }
 0x2f1   : > { %v1743_v33 = vmul.f32 0.5, %v1742_v1 }
 0x2f2   : > { %v1718_v45 = vmax.f32 %v1710_v36, 0.0  ;;  %v1711_v38 = vsub.f32 %v1695_v7, %v1703_v48  ;;  %v4233_v48 = vld [vmem:[%s4467_s15] ss:$0 sm:$0xff] }
 0x2f3   : > { %v1744_v34 = vsub.f32 1.5, %v1743_v33 }
 0x2f4   : > { %v3253_v53 = vpop.eup %3252  ;;  %v4183_v47 = vadd.f32 1e-05, %v1718_v45  ;;  %v1719_v17 = vmax.f32 %v1711_v38, 0.0 }
 0x2f5   : > { %v1745_v37 = vmul.f32 %v3251_v23, %v1744_v34  ;;  %v1751_v12 = vmul.f32 %v3253_v53, %v1733_v25  ;;  %v1653_v61 = vpop.xlane.xlu2 %1652  ;;  %vm1757_vm0 = vweird.f32 %v3253_v53  ;;  %v4238_v34 = vld [vmem:[%s4466_s14] ss:$0 sm:$0xff] }
 0x2f6   : > { %3254 = vrsqrt.f32 %v4183_v47  ;;  %v4188_v8 = vadd.f32 1e-05, %v1719_v17  ;;  %v4191_v20 = vmul.f32 %v1653_v61, %v3539_v26  ;;  %vm1758_vm2 = vmor %vm1756_vm1, %vm1757_vm0  ;;  %vm1766_vm4 = vweird.f32 %v4183_v47 }
 0x2f7   : > { %v1749_v50 = vsel %vm1748_vm15, %v3251_v23, %v1745_v37  ;;  %v1752_v39 = vmul.f32 %v3253_v53, %v1751_v12  ;;  %v1685_v18 = vpop.xlane.xlu0 %1684 }
 0x2f8   : > { %v1820_v51 = vmul.f32 %v1749_v50, %v1724_v41  ;;  %3256 = vrsqrt.f32 %v4188_v8  ;;  %v1704_v56 = vmul.f32 %v4191_v20, %v4191_v20  ;;  %v1696_v54 = vmul.f32 %v1685_v18, %v3539_v26 }
 0x2f9   : > { %v1753_v49 = vmul.f32 0.5, %v1752_v39  ;;  %vm1776_vm7 = vweird.f32 %v4188_v8 }
 0x2fa   : > { %v1832_v35 = vmul.f32 %v4196_v11, %v1820_v51  ;;  %v1712_v19 = vsub.f32 %v1696_v54, %v1704_v56 }
 0x2fb   : > { %v1754_v14 = vsub.f32 1.5, %v1753_v49 }
 0x2fc   : > { %v3255_v15 = vpop.eup %3254  ;;  %v4209_v16 = vadd.f32 %v4204_v52, %v1832_v35  ;;  %v1720_v32 = vmax.f32 %v1712_v19, 0.0 }
 0x2fd   : > { %v1755_v57 = vmul.f32 %v3253_v53, %v1754_v14  ;;  %v1761_v58 = vmul.f32 %v3255_v15, %v4183_v47  ;;  %v1655_v59 = vpop.xlane.xlu1 %1654  ;;  %vm1767_vm3 = vweird.f32 %v3255_v15  ;;  %v1727_v47 = vsub.f32 %v4010_v31, %v4178_v63 }
 0x2fe   : > { %v3257_v0 = vpop.eup %3256  ;;  %v4215_v6 = vmul.f32 %v1655_v59, %v3539_v26  ;;  %v4218_v23 = vadd.f32 1e-05, %v1720_v32  ;;  %v1869_v36 = vsub.f32 %v4209_v16, %v1860_v3  ;;  %vm1768_vm6 = vmor %vm1766_vm4, %vm1767_vm3 }
 0x2ff   : > { %v1759_v62 = vsel %vm1758_vm2, %v3253_v53, %v1755_v57  ;;  %v1762_v9 = vmul.f32 %v3255_v15, %v1761_v58  ;;  %v1771_v21 = vmul.f32 %v3257_v0, %v4188_v8  ;;  %v1687_v43 = vpop.xlane.xlu2 %1686  ;;  %vm1777_vm5 = vweird.f32 %v3257_v0 }
 0x300   : > { %v1821_v60 = vmul.f32 %v1759_v62, %v1725_v42  ;;  %v1705_v25 = vmul.f32 %v4215_v6, %v4215_v6  ;;  %v1697_v55 = vmul.f32 %v1687_v43, %v3539_v26  ;;  %3258 = vrsqrt.f32 %v4218_v23  ;;  %vm1778_vm8 = vmor %vm1776_vm7, %vm1777_vm5 }
 0x301   : > { %v1763_v13 = vmul.f32 0.5, %v1762_v9  ;;  %v1772_v27 = vmul.f32 %v3257_v0, %v1771_v21  ;;  %v1726_v53 = vsub.f32 %v4002_v46, %v4157_v4  ;;  %v1881_v51 = vmul.f32 %v4233_v48, %v1869_v36 }
 0x302   : > { %v1833_v40 = vmul.f32 %v4196_v11, %v1821_v60  ;;  %v1713_v1 = vsub.f32 %v1697_v55, %v1705_v25  ;;  %v2150_v8 = vmul.f32 %v4238_v34, %v1869_v36  ;;  %vm1786_vm9 = vweird.f32 %v4218_v23 }
 0x303   : > { %v1764_v28 = vsub.f32 1.5, %v1763_v13  ;;  %v1773_v24 = vmul.f32 0.5, %v1772_v27  ;;  %v1889_v32 = vadd.f32 %v1881_v51, %v1860_v3  ;;  %v1728_v36 = vsub.f32 %v4016_v44, %v4191_v20 }
 0x304   : > { %v4227_v29 = vadd.f32 %v4204_v52, %v1833_v40  ;;  %v1721_v45 = vmax.f32 %v1713_v1, 0.0  ;;  %v2158_v9 = vadd.f32 %v2150_v8, %v1860_v3 }
 0x305   : > { %v1765_v7 = vmul.f32 %v3255_v15, %v1764_v28  ;;  %v1774_v33 = vsub.f32 1.5, %v1773_v24  ;;  %v1657_v38 = vpop.xlane.xlu0 %1656 }
 0x306   : > { %v4245_v17 = vmul.f32 %v1657_v38, %v3539_v26  ;;  %v1870_v37 = vsub.f32 %v4227_v29, %v4209_v16  ;;  %v4250_v41 = vadd.f32 1e-05, %v1721_v45  ;;  %v3259_v39 = vpop.eup %3258 }
 0x307   : > { %v1769_v12 = vsel %vm1768_vm6, %v3255_v15, %v1765_v7  ;;  %v1775_v61 = vmul.f32 %v3257_v0, %v1774_v33  ;;  %v1689_v50 = vpop.xlane.xlu1 %1688  ;;  %v1781_v49 = vmul.f32 %v3259_v39, %v4218_v23  ;;  %vm1787_vm10 = vweird.f32 %v3259_v39 }
 0x308   : > { %v1822_v18 = vmul.f32 %v1769_v12, %v1726_v53  ;;  %v1706_v4 = vmul.f32 %v4245_v17, %v4245_v17  ;;  %v1698_v63 = vmul.f32 %v1689_v50, %v3539_v26  ;;  %3260 = vrsqrt.f32 %v4250_v41  ;;  %vm1788_vm11 = vmor %vm1786_vm9, %vm1787_vm10 }
 0x309   : > { %v1779_v56 = vsel %vm1778_vm8, %v3257_v0, %v1775_v61  ;;  %v1882_v14 = vmul.f32 %v4233_v48, %v1870_v37  ;;  %v1782_v19 = vmul.f32 %v3259_v39, %v1781_v49  ;;  %v2151_v15 = vmul.f32 %v4238_v34, %v1870_v37 }
 0x30a   : > { %v1823_v54 = vmul.f32 %v1779_v56, %v1727_v47  ;;  %v1714_v35 = vsub.f32 %v1698_v63, %v1706_v4  ;;  %v1834_v57 = vmul.f32 %v4196_v11, %v1822_v18  ;;  %vm1796_vm13 = vweird.f32 %v4250_v41 }
 0x30b   : > { %v1890_v59 = vadd.f32 %v1882_v14, %v4209_v16  ;;  %v1783_v42 = vmul.f32 0.5, %v1782_v19  ;;  %v2159_v21 = vadd.f32 %v2151_v15, %v4209_v16  ;;  %v1729_v49 = vsub.f32 %v4022_v2, %v4215_v6 }
 0x30c   : > { %v1722_v58 = vmax.f32 %v1714_v35, 0.0  ;;  %v1835_v0 = vmul.f32 %v4196_v11, %v1823_v54  ;;  %v1846_v43 = vadd.f32 %v4204_v52, %v1834_v57 }
 0x30d   : > { %v1659_v62 = vpop.xlane.xlu2 %1658  ;;  %v1913_v13 = vpack.c.bf16 %v1890_v59, %v1889_v32  ;;  %v1784_v40 = vsub.f32 1.5, %v1783_v42  ;;  %v2166_v28 = vpack.c.bf16 %v2159_v21, %v2158_v9  ;;  %v1730_v21 = vsub.f32 %v4028_v5, %v4245_v17  ;;  %v3051_v17 = vld [vmem:[%s4469_s17 + $0x30] sm:$0xff] }
 0x30e   : > { %v1738_v60 = vadd.f32 1e-05, %v1722_v58  ;;  %v4268_v25 = vmul.f32 %v1659_v62, %v3539_v26  ;;  %v4271_v27 = vadd.f32 %v4204_v52, %v1835_v0  ;;  %v3261_v55 = vpop.eup %3260  ;;  %v1871_v37 = vsub.f32 %v1846_v43, %v4227_v29 }
 0x30f   : > { %v1691_v24 = vpop.xlane.xlu0 %1690  ;;  %v1791_v3 = vmul.f32 %v3261_v55, %v4250_v41  ;;  %1973 = vmatmul.bf16.vlgmr.msrb.gmra.mxu0 %v1913_v13  ;;  %v1785_v16 = vmul.f32 %v3259_v39, %v1784_v40  ;;  %2274 = vmatmul.bf16.vlgmr.msra.gmra.mxu1 %v2166_v28  ;;  %vm1797_vm12 = vweird.f32 %v3261_v55  ;;  %v3060_v40 = vld [vmem:[%s4469_s17 + $0x78] sm:$0xff] }
 0x310   : > { %3262 = vrsqrt.f32 %v1738_v60  ;;  %v1707_v1 = vmul.f32 %v4268_v25, %v4268_v25  ;;  %2303 = vmatmul.bf16.vlgmr.msrb.gmra.mxu2 %v2166_v28  ;;  %v1699_v23 = vmul.f32 %v1691_v24, %v3539_v26  ;;  %v1872_v33 = vsub.f32 %v4271_v27, %v1846_v43  ;;  %vm1798_vm14 = vmor %vm1796_vm13, %vm1797_vm12  ;;  %2521 = vmatpush.bf16.msra.mxu0 %v3060_v40 }
 0x311   : > { %v1792_v7 = vmul.f32 %v3261_v55, %v1791_v3  ;;  %v1789_v45 = vsel %vm1788_vm11, %v3259_v39, %v1785_v16  ;;  %v1883_v51 = vmul.f32 %v4233_v48, %v1871_v37  ;;  %v2152_v54 = vmul.f32 %v4238_v34, %v1871_v37  ;;  %v3059_v16 = vld [vmem:[%s4469_s17 + $0x70] sm:$0xff]  ;;  %3111 = vmatpush.bf16.msra.mxu2 %v3060_v40 }
 0x312   : > { %v1824_v38 = vmul.f32 %v1789_v45, %v1728_v36  ;;  %v1715_v47 = vsub.f32 %v1699_v23, %v1707_v1  ;;  %v1884_v18 = vmul.f32 %v4233_v48, %v1872_v33  ;;  %v2153_v26 = vmul.f32 %v4238_v34, %v1872_v33  ;;  %v3050_v45 = vld [vmem:[%s4469_s17 + $0x28] sm:$0xff] }
 0x313   : > { %v1793_v53 = vmul.f32 0.5, %v1792_v7  ;;  %vm1806_vm15 = vweird.f32 %v1738_v60  ;;  %v1891_v57 = vadd.f32 %v1883_v51, %v4227_v29  ;;  %v2160_v32 = vadd.f32 %v2152_v54, %v4227_v29  ;;  %v3052_v29 = vld [vmem:[%s4469_s17 + $0x38] sm:$0xff] }
 0x314   : > { %v1723_v50 = vmax.f32 %v1715_v47, 0.0  ;;  %v1836_v20 = vmul.f32 %v4196_v11, %v1824_v38  ;;  %v1892_v14 = vadd.f32 %v1884_v18, %v1846_v43  ;;  %v2161_v15 = vadd.f32 %v2153_v26, %v1846_v43  ;;  %2492 = vmatpush.bf16.msrb.mxu3 %v3052_v29  ;;  %2522 = vmatpush.bf16.msra.mxu0 %v3059_v16 }
 0x315   : > { %v1794_v61 = vsub.f32 1.5, %v1793_v53  ;;  %v3058_v53 = vld [vmem:[%s4469_s17 + $0x68] sm:$0xff]  ;;  %3112 = vmatpush.bf16.msra.mxu2 %v3059_v16 }
 0x316   : > { %v3263_v12 = vpop.eup %3262  ;;  %v1739_v39 = vadd.f32 1e-05, %v1723_v50  ;;  %v1848_v56 = vadd.f32 %v4204_v52, %v1836_v20  ;;  %v1914_v6 = vpack.c.bf16 %v1892_v14, %v1891_v57  ;;  %v2167_v42 = vpack.c.bf16 %v2161_v15, %v2160_v32  ;;  %v3049_v20 = vld [vmem:[%s4469_s17 + $0x20] sm:$0xff] }
 0x317   : > { %v1801_v4 = vmul.f32 %v3263_v12, %v1738_v60  ;;  %v1795_v63 = vmul.f32 %v3261_v55, %v1794_v61  ;;  %vm1807_vm0 = vweird.f32 %v3263_v12 }
 0x318   : > { %3264 = vrsqrt.f32 %v1739_v39  ;;  %vm1808_vm1 = vmor %vm1806_vm15, %vm1807_vm0  ;;  %v1873_v24 = vsub.f32 %v1848_v56, %v4271_v27  ;;  %2493 = vmatpush.bf16.msrb.mxu3 %v3051_v17  ;;  %vm1816_vm3 = vweird.f32 %v1739_v39  ;;  %2523 = vmatpush.bf16.msra.mxu0 %v3058_v53 }
 0x319   : > { %v1802_v8 = vmul.f32 %v3263_v12, %v1801_v4  ;;  %v1799_v35 = vsel %vm1798_vm14, %v3261_v55, %v1795_v63  ;;  %3113 = vmatpush.bf16.msra.mxu2 %v3058_v53 }
 0x31a   : > { %v1825_v41 = vmul.f32 %v1799_v35, %v1729_v49  ;;  %v1885_v38 = vmul.f32 %v4233_v48, %v1873_v24  ;;  %v2154_v37 = vmul.f32 %v4238_v34, %v1873_v24 }
 0x31b   : > { %v1803_v19 = vmul.f32 0.5, %v1802_v8 }
 0x31c   : > { %v1837_v59 = vmul.f32 %v4196_v11, %v1825_v41  ;;  %2494 = vmatpush.bf16.msrb.mxu3 %v3050_v45  ;;  %v1893_v26 = vadd.f32 %v1885_v38, %v4271_v27  ;;  %v2162_v63 = vadd.f32 %v2154_v37, %v4271_v27  ;;  %v3047_v27 = vld [vmem:[%s4469_s17 + $0x10] sm:$0xff] }
 0x31d   : > { %v1804_v58 = vsub.f32 1.5, %v1803_v19 }
 0x31e   : > { %v4295_v62 = vadd.f32 %v4204_v52, %v1837_v59  ;;  %v3265_v9 = vpop.eup %3264  ;;  %v3057_v59 = vld [vmem:[%s4469_s17 + $0x60] sm:$0xff] }
 0x31f   : > { %v1805_v0 = vmul.f32 %v3263_v12, %v1804_v58  ;;  %1978 = vmatmul.bf16.gmra.mxu0 %v1914_v6  ;;  %v1811_v60 = vmul.f32 %v3265_v9, %v1739_v39  ;;  %2279 = vmatmul.bf16.gmra.mxu1 %v2167_v42  ;;  %vm1817_vm2 = vweird.f32 %v3265_v9  ;;  %v3055_v6 = vld [vmem:[%s4469_s17 + $0x50] sm:$0xff] }
 0x320   : > { %2308 = vmatmul.bf16.gmra.mxu2 %v2167_v42  ;;  %v1874_v55 = vsub.f32 %v4295_v62, %v1848_v56  ;;  %vm1818_vm4 = vmor %vm1816_vm3, %vm1817_vm2  ;;  %2495 = vmatpush.bf16.msrb.mxu3 %v3049_v20  ;;  %v3054_v42 = vld [vmem:[%s4469_s17 + $0x48] sm:$0xff] }
 0x321   : > { %v1809_v43 = vsel %vm1808_vm1, %v3263_v12, %v1805_v0  ;;  %v1812_v28 = vmul.f32 %v3265_v9, %v1811_v60  ;;  %v1731_v12 = vsub.f32 %v4034_v10, %v4268_v25  ;;  %2524 = vmatpush.bf16.msra.mxu0 %v3057_v59  ;;  %3114 = vmatpush.bf16.msra.mxu2 %v3057_v59  ;;  %v3045_v0 = vld [vmem:[%s4469_s17] sm:$0xff] }
 0x322   : > { %v1826_v13 = vmul.f32 %v1809_v43, %v1730_v21  ;;  %v1886_v36 = vmul.f32 %v4233_v48, %v1874_v55  ;;  %v2155_v33 = vmul.f32 %v4238_v34, %v1874_v55 }
 0x323   : > { %v1813_v1 = vmul.f32 0.5, %v1812_v28 }
 0x324   : > { %v1838_v3 = vmul.f32 %v4196_v11, %v1826_v13  ;;  %v1894_v61 = vadd.f32 %v1886_v36, %v1848_v56  ;;  %v2163_v18 = vadd.f32 %v2155_v33, %v1848_v56  ;;  %v3048_v56 = vld [vmem:[%s4469_s17 + $0x18] sm:$0xff] }
 0x325   : > { %v1814_v23 = vsub.f32 1.5, %v1813_v1  ;;  %2496 = vmatpush.bf16.msrb.mxu3 %v3048_v56 }
 0x326   : > { %v1850_v7 = vadd.f32 %v4204_v52, %v1838_v3  ;;  %v1915_v51 = vpack.c.bf16 %v1894_v61, %v1893_v26  ;;  %v2168_v25 = vpack.c.bf16 %v2163_v18, %v2162_v63 }
 0x327   : > { %v1815_v47 = vmul.f32 %v3265_v9, %v1814_v23 }
 0x329   : > { %v1819_v50 = vsel %vm1818_vm4, %v3265_v9, %v1815_v47  ;;  %2497 = vmatpush.bf16.msrb.mxu3 %v3047_v27 }
 0x32a   : > { %v1827_v4 = vmul.f32 %v1819_v50, %v1731_v12 }
 0x32c   : > { %v1839_v39 = vmul.f32 %v4196_v11, %v1827_v4  ;;  %v1875_v11 = vsub.f32 %v1850_v7, %v4295_v62 }
 0x32e   : > { %v1851_v49 = vadd.f32 %v4204_v52, %v1839_v39  ;;  %v1887_v14 = vmul.f32 %v4233_v48, %v1875_v11  ;;  %v2156_v52 = vmul.f32 %v4238_v34, %v1875_v11 }
 0x32f   : > { %1983 = vmatmul.bf16.gmra.mxu0 %v1915_v51  ;;  %2284 = vmatmul.bf16.gmra.mxu1 %v2168_v25 }
 0x330   : > { %2313 = vmatmul.bf16.gmra.mxu2 %v2168_v25  ;;  %v1876_v8 = vsub.f32 %v1851_v49, %v1850_v7  ;;  %1868 = vst [vmem:[#allocation8 + $0x18] sm:$0xff] %v1851_v49  ;;  %v1895_v15 = vadd.f32 %v1887_v14, %v4295_v62  ;;  %v2164_v57 = vadd.f32 %v2156_v52, %v4295_v62  ;;  %v3053_v62 = vld [vmem:[%s4469_s17 + $0x40] sm:$0xff] }
 0x332   : > { %v1888_v54 = vmul.f32 %v4233_v48, %v1876_v8  ;;  %v2157_v35 = vmul.f32 %v4238_v34, %v1876_v8  ;;  %v3056_v48 = vld [vmem:[%s4469_s17 + $0x58] sm:$0xff]  ;;  %v3046_v34 = vld [vmem:[%s4469_s17 + $0x8] sm:$0xff] }
 0x333   : > { %2525 = vmatpush.bf16.msra.mxu0 %v3056_v48  ;;  %3115 = vmatpush.bf16.msra.mxu2 %v3056_v48 }
 0x334   : > { %v1896_v41 = vadd.f32 %v1888_v54, %v1850_v7  ;;  %v2165_v19 = vadd.f32 %v2157_v35, %v1850_v7  ;;  %2498 = vmatpush.bf16.msrb.mxu3 %v3046_v34 }
 0x336   : > { %v1916_v58 = vpack.c.bf16 %v1896_v41, %v1895_v15  ;;  %v2169_v32 = vpack.c.bf16 %v2165_v19, %v2164_v57 }
 0x337   : > { %2526 = vmatpush.bf16.msra.mxu0 %v3055_v6  ;;  %3116 = vmatpush.bf16.msra.mxu2 %v3055_v6 }
 0x338   : > { %2499 = vmatpush.bf16.msrb.mxu3 %v3045_v0 }
 0x33b   : > { %2527 = vmatpush.bf16.msra.mxu0 %v3054_v42  ;;  %3117 = vmatpush.bf16.msra.mxu2 %v3054_v42 }
 0x33f   : > { %1988 = vmatmul.bf16.gmra.mxu0 %v1916_v58  ;;  %2289 = vmatmul.bf16.gmra.mxu1 %v2169_v32 }
 0x340   : > { %2318 = vmatmul.bf16.gmra.mxu2 %v2169_v32  ;;  %2528 = vmatpush.bf16.msra.mxu0 %v3053_v62 }
 0x341   : > { %3118 = vmatpush.bf16.msra.mxu2 %v3053_v62 }
 0x38c   : > { %v2275_v9 = vpop.f32.mrf.mxu1 }
 0x38d   : > { %v2324_v43 = vmax.f32 %v2275_v9, 0.0  ;;  %v1974_v9 = vpop.f32.mrf.mxu0 }
 0x38f   : > { %v2340_v13 = vmul.f32 %v2324_v43, %v2324_v43 }
 0x393   : > { %v2304_v21 = vpop.f32.mrf.mxu2 }
 0x394   : > { %v2277_v60 = vpop.f32.mrf.mxu1  ;;  %v2325_v40 = vmax.f32 %v2304_v21, 0.0 }
 0x395   : > { %v2326_v29 = vmax.f32 %v2277_v60, 0.0  ;;  %v1976_v21 = vpop.f32.mrf.mxu0 }
 0x396   : > { %v2341_v16 = vmul.f32 %v2325_v40, %v2325_v40 }
 0x397   : > { %v2342_v55 = vmul.f32 %v2326_v29, %v2326_v29  ;;  %v2851_v29 = vmul.f32 -1.442695, %v1974_v9 }
 0x399   : > { %v2356_v28 = vpack.c.bf16 %v2342_v55, %v2340_v13  ;;  %3266 = vpow2.f32 %v2851_v29  ;;  %v2852_v55 = vmul.f32 -1.442695, %v1976_v21 }
 0x39b   : > { %v2306_v17 = vpop.f32.mrf.mxu2  ;;  %2500 = vmatmul.bf16.vlgmr.msrb.gmra.mxu3 %v2356_v28  ;;  %3268 = vpow2.f32 %v2852_v55 }
 0x39c   : > { %v2327_v24 = vmax.f32 %v2306_v17, 0.0  ;;  %v2280_v3 = vpop.f32.mrf.mxu1 }
 0x39d   : > { %v2328_v23 = vmax.f32 %v2280_v3, 0.0  ;;  %v1979_v43 = vpop.f32.mrf.mxu0 }
 0x39e   : > { %v2343_v1 = vmul.f32 %v2327_v24, %v2327_v24  ;;  %v2853_v24 = vmul.f32 -1.442695, %v1979_v43 }
 0x39f   : > { %v2344_v38 = vmul.f32 %v2328_v23, %v2328_v23  ;;  %v3267_v40 = vpop.eup %3266 }
 0x3a0   : > { %v2357_v36 = vpack.c.bf16 %v2343_v1, %v2341_v16  ;;  %v2018_v28 = vadd.f32 1.0, %v3267_v40 }
 0x3a1   : > { %v3269_v3 = vpop.eup %3268 }
 0x3a2   : > { %2529 = vmatmul.bf16.vlgmr.msra.gmra.mxu0 %v2357_v36  ;;  %3270 = vrcp.f32 %v2018_v28  ;;  %v2019_v16 = vadd.f32 1.0, %v3269_v3  ;;  %vm2031_vm6 = vweird.f32 %v2018_v28 }
 0x3a3   : > { %v2309_v7 = vpop.f32.mrf.mxu2  ;;  %3272 = vpow2.f32 %v2853_v24 }
 0x3a4   : > { %v2282_v33 = vpop.f32.mrf.mxu1  ;;  %v2329_v47 = vmax.f32 %v2309_v7, 0.0  ;;  %3274 = vrcp.f32 %v2019_v16  ;;  %vm2046_vm10 = vweird.f32 %v2019_v16 }
 0x3a5   : > { %v2330_v45 = vmax.f32 %v2282_v33, 0.0  ;;  %v1981_v60 = vpop.f32.mrf.mxu0 }
 0x3a6   : > { %v2345_v18 = vmul.f32 %v2329_v47, %v2329_v47  ;;  %v2854_v36 = vmul.f32 -1.442695, %v1981_v60 }
 0x3a7   : > { %v2346_v53 = vmul.f32 %v2330_v45, %v2330_v45 }
 0x3a8   : > { %v3271_v1 = vpop.eup %3270  ;;  %3276 = vpow2.f32 %v2854_v36 }
 0x3a9   : > { %v2358_v37 = vpack.c.bf16 %v2346_v53, %v2344_v38  ;;  %v3273_v23 = vpop.eup %3272  ;;  %v2027_v33 = vmul.f32 %v3271_v1, %v2018_v28  ;;  %vm2032_vm5 = vweird.f32 %v3271_v1 }
 0x3aa   : > { %v4368_v45 = vadd.f32 1.0, %v3273_v23  ;;  %v3275_v53 = vpop.eup %3274  ;;  %vm2033_vm7 = vmor %vm2031_vm6, %vm2032_vm5 }
 0x3ab   : > { %v2311_v12 = vpop.f32.mrf.mxu2  ;;  %2505 = vmatmul.bf16.gmra.mxu3 %v2358_v37  ;;  %v2028_v38 = vsub.f32 1.0, %v2027_v33  ;;  %vm2047_vm9 = vweird.f32 %v3275_v53 }
 0x3ac   : > { %v2331_v61 = vmax.f32 %v2311_v12, 0.0  ;;  %v2285_v50 = vpop.f32.mrf.mxu1  ;;  %3278 = vrcp.f32 %v4368_v45  ;;  %vm2048_vm11 = vmor %vm2046_vm10, %vm2047_vm9  ;;  %vm2061_vm14 = vweird.f32 %v4368_v45  ;;  %v2065_v24 = vand.u32 2147483647, %v4368_v45 }
 0x3ad   : > { %v2332_v63 = vmax.f32 %v2285_v50, 0.0  ;;  %v1984_v13 = vpop.f32.mrf.mxu0  ;;  %v2029_v12 = vmul.f32 %v3271_v1, %v2028_v38 }
 0x3ae   : > { %v2347_v20 = vmul.f32 %v2331_v61, %v2331_v61  ;;  %v2855_v47 = vmul.f32 -1.442695, %v1984_v13  ;;  %v3277_v37 = vpop.eup %3276  ;;  %v2042_v61 = vmul.f32 %v3275_v53, %v2019_v16  ;;  %vm2066_vm0 = vcmp.eq.f32.partialorder %v2065_v24, 8.507059e+37 }
 0x3af   : > { %v2348_v25 = vmul.f32 %v2332_v63, %v2332_v63  ;;  %v2037_v63 = vand.u32 2147483648, %v2018_v28 }
 0x3b0   : > { %v2359_v4 = vpack.c.bf16 %v2347_v20, %v2345_v18  ;;  %3280 = vpow2.f32 %v2855_v47  ;;  %v4373_v18 = vadd.f32 1.0, %v3277_v37  ;;  %v2030_v20 = vadd.f32 %v3271_v1, %v2029_v12 }
 0x3b2   : > { %2534 = vmatmul.bf16.gmra.mxu0 %v2359_v4  ;;  %v2043_v4 = vsub.f32 1.0, %v2042_v61  ;;  %3282 = vrcp.f32 %v4373_v18  ;;  %v2082_v12 = vand.u32 2147483648, %v4373_v18  ;;  %vm2076_vm2 = vweird.f32 %v4373_v18 }
 0x3b3   : > { %v2314_v26 = vpop.f32.mrf.mxu2 }
 0x3b4   : > { %v2287_v39 = vpop.f32.mrf.mxu1  ;;  %v2333_v49 = vmax.f32 %v2314_v26, 0.0  ;;  %v4375_v26 = vpop.eup %3278 }
 0x3b5   : > { %v2334_v51 = vmax.f32 %v2287_v39, 0.0  ;;  %v1986_v17 = vpop.f32.mrf.mxu0  ;;  %vm2062_vm13 = vweird.f32 %v4375_v26 }
 0x3b6   : > { %v2349_v35 = vmul.f32 %v2333_v49, %v2333_v49  ;;  %v2856_v39 = vmul.f32 -1.442695, %v1986_v17  ;;  %v2044_v49 = vmul.f32 %v3275_v53, %v2043_v4  ;;  %vm2063_vm15 = vmor %vm2061_vm14, %vm2062_vm13  ;;  %v2080_v4 = vand.u32 2147483647, %v4373_v18 }
 0x3b7   : > { %v2350_v56 = vmul.f32 %v2334_v51, %v2334_v51  ;;  %v2035_v51 = vand.u32 2147483647, %v2018_v28  ;;  %v2067_v28 = vand.u32 2147483648, %v4368_v45 }
 0x3b8   : > { %3284 = vpow2.f32 %v2856_v39  ;;  %vm2081_vm4 = vcmp.eq.f32.partialorder %v2080_v4, 8.507059e+37 }
 0x3b9   : > { %v2360_v8 = vpack.c.bf16 %v2350_v56, %v2348_v25  ;;  %v3281_v25 = vpop.eup %3280  ;;  %v2034_v56 = vsel %vm2033_vm7, %v3271_v1, %v2030_v20  ;;  %vm2036_vm8 = vcmp.eq.f32.partialorder %v2035_v51, 8.507059e+37 }
 0x3bb   : > { %v2316_v27 = vpop.f32.mrf.mxu2  ;;  %2510 = vmatmul.bf16.gmra.mxu3 %v2360_v8  ;;  %v2057_v8 = vmul.f32 %v4375_v26, %v4368_v45 }
 0x3bc   : > { %v2335_v11 = vmax.f32 %v2316_v27, 0.0  ;;  %v2290_v54 = vpop.f32.mrf.mxu1 }
 0x3bd   : > { %v2336_v19 = vmax.f32 %v2290_v54, 0.0  ;;  %v1989_v7 = vpop.f32.mrf.mxu0 }
 0x3be   : > { %v2351_v14 = vmul.f32 %v2335_v11, %v2335_v11  ;;  %v2038_v11 = vor.u32 1.1754944e-38, %v2037_v63  ;;  %v2857_v60 = vmul.f32 -1.442695, %v1989_v7  ;;  %v2068_v7 = vor.u32 1.1754944e-38, %v2067_v28 }
 0x3bf   : > { %v2352_v58 = vmul.f32 %v2336_v19, %v2336_v19  ;;  %v2045_v19 = vadd.f32 %v3275_v53, %v2044_v49 }
 0x3c0   : > { %v2361_v52 = vpack.c.bf16 %v2351_v14, %v2349_v35  ;;  %v4380_v14 = vadd.f32 1.0, %v3281_v25  ;;  %v2083_v25 = vor.u32 1.1754944e-38, %v2082_v12 }
 0x3c2   : > { %2539 = vmatmul.bf16.gmra.mxu0 %v2361_v52  ;;  %v2039_v52 = vsel %vm2036_vm8, %v2038_v11, %v2034_v56  ;;  %3286 = vrcp.f32 %v4380_v14  ;;  %v2097_v11 = vand.u32 2147483648, %v4380_v14  ;;  %vm2091_vm6 = vweird.f32 %v4380_v14 }
 0x3c3   : > { %v2319_v41 = vpop.f32.mrf.mxu2 }
 0x3c4   : > { %v2292_v15 = vpop.f32.mrf.mxu1  ;;  %v2337_v59 = vmax.f32 %v2319_v41, 0.0 }
 0x3c5   : > { %v2338_v57 = vmax.f32 %v2292_v15, 0.0  ;;  %v4371_v50 = vpop.f32.mrf.mxu0  ;;  %v2058_v15 = vsub.f32 1.0, %v2057_v8 }
 0x3c6   : > { %v2353_v0 = vmul.f32 %v2337_v59, %v2337_v59  ;;  %v2050_v59 = vand.u32 2147483647, %v2019_v16  ;;  %v2858_v45 = vmul.f32 -1.442695, %v4371_v50 }
 0x3c7   : > { %v2354_v32 = vmul.f32 %v2338_v57, %v2338_v57  ;;  %v4382_v57 = vpop.eup %3282 }
 0x3c8   : > { %vm2051_vm12 = vcmp.eq.f32.partialorder %v2050_v59, 8.507059e+37  ;;  %vm2077_vm1 = vweird.f32 %v4382_v57 }
 0x3c9   : > { %v2362_v48 = vpack.c.bf16 %v2354_v32, %v2352_v58  ;;  %v2052_v58 = vand.u32 2147483648, %v2019_v16  ;;  %vm2078_vm3 = vmor %vm2076_vm2, %vm2077_vm1 }
 0x3cb   : > { %v2321_v34 = vpop.f32.mrf.mxu2  ;;  %2515 = vmatmul.bf16.gmra.mxu3 %v2362_v48  ;;  %v3285_v48 = vpop.eup %3284 }
 0x3cc   : > { %v2339_v6 = vmax.f32 %v2321_v34, 0.0  ;;  %v2049_v34 = vsel %vm2048_vm11, %v3275_v53, %v2045_v19  ;;  %v4394_v40 = vpop.eup %3286 }
 0x3cd   : > { %v2087_v1 = vmul.f32 %v4394_v40, %v4380_v14  ;;  %vm2092_vm5 = vweird.f32 %v4394_v40 }
 0x3ce   : > { %v2355_v42 = vmul.f32 %v2339_v6, %v2339_v6  ;;  %v2059_v6 = vmul.f32 %v4375_v26, %v2058_v15  ;;  %vm2093_vm7 = vmor %vm2091_vm6, %vm2092_vm5 }
 0x3cf   : > { %v2088_v47 = vsub.f32 1.0, %v2087_v1 }
 0x3d0   : > { %v2363_v62 = vpack.c.bf16 %v2355_v42, %v2353_v0  ;;  %v2072_v0 = vmul.f32 %v4382_v57, %v4373_v18  ;;  %v2060_v13 = vadd.f32 %v4375_v26, %v2059_v6 }
 0x3d1   : > { %v2089_v50 = vmul.f32 %v4394_v40, %v2088_v47 }
 0x3d2   : > { %2544 = vmatmul.bf16.vlgmr.msra.gmra.mxu2 %v2363_v62  ;;  %v2053_v62 = vor.u32 1.1754944e-38, %v2052_v58  ;;  %v2073_v55 = vsub.f32 1.0, %v2072_v0  ;;  %v2064_v3 = vsel %vm2063_vm15, %v4375_v26, %v2060_v13  ;;  %v2098_v58 = vor.u32 1.1754944e-38, %v2097_v11 }
 0x3d3   : > { %v2069_v33 = vsel %vm2066_vm0, %v2068_v7, %v2064_v3  ;;  %v2090_v18 = vadd.f32 %v4394_v40, %v2089_v50 }
 0x3d4   : > { %v2054_v43 = vsel %vm2051_vm12, %v2053_v62, %v2049_v34  ;;  %v2074_v16 = vmul.f32 %v4382_v57, %v2073_v55 }
 0x3d6   : > { %v2075_v53 = vadd.f32 %v4382_v57, %v2074_v16 }
 0x3d8   : > { %v2079_v26 = vsel %vm2078_vm3, %v4382_v57, %v2075_v53 }
 0x3d9   : > { %v2084_v49 = vsel %vm2081_vm4, %v2083_v25, %v2079_v26 }
 0x41e   : > { %v2501_v27 = vpop.f32.mrf.mxu3 }
 0x41f   : > { %v2530_v54 = vpop.f32.mrf.mxu0 }
 0x420   : > { %v2531_v35 = vadd.f32 %v2530_v54, %v2501_v27 }
 0x422   : > { %v2550_v41 = vmul.f32 %v2531_v35, %v2039_v52  ;;  %v2095_v52 = vand.u32 2147483647, %v4380_v14 }
 0x424   : > { %v2558_v32 = vadd.f32 %v2550_v41, %v3992_v22  ;;  %v4390_v22 = vadd.f32 1.0, %v3285_v48  ;;  %v2094_v41 = vsel %vm2093_vm7, %v4394_v40, %v2090_v18  ;;  %vm2096_vm8 = vcmp.eq.f32.partialorder %v2095_v52, 8.507059e+37 }
 0x425   : > { %v2099_v34 = vsel %vm2096_vm8, %v2098_v58, %v2094_v41 }
 0x426   : > { %2566 = vst [vmem:[%s3483_s27] sm:$0xff] %v2558_v32  ;;  %v2503_v42 = vpop.f32.mrf.mxu3  ;;  %3288 = vrcp.f32 %v4390_v22  ;;  %v2112_v14 = vand.u32 2147483648, %v4390_v22  ;;  %vm2106_vm10 = vweird.f32 %v4390_v22 }
 0x427   : > { %v2532_v9 = vpop.f32.mrf.mxu0  ;;  %3290 = vpow2.f32 %v2857_v60 }
 0x428   : > { %v2533_v21 = vadd.f32 %v2532_v9, %v2503_v42  ;;  %3292 = vpow2.f32 %v2858_v45  ;;  %v2110_v42 = vand.u32 2147483647, %v4390_v22 }
 0x42a   : > { %v2551_v29 = vmul.f32 %v2533_v21, %v2054_v43  ;;  %v2113_v43 = vor.u32 1.1754944e-38, %v2112_v14  ;;  %vm2111_vm12 = vcmp.eq.f32.partialorder %v2110_v42, 8.507059e+37 }
 0x42c   : > { %v2559_v17 = vadd.f32 %v2551_v29, %v3996_v30  ;;  %v3289_v37 = vpop.eup %3288 }
 0x42d   : > { %v3291_v61 = vpop.eup %3290  ;;  %v2102_v63 = vmul.f32 %v3289_v37, %v4390_v22  ;;  %vm2107_vm9 = vweird.f32 %v3289_v37 }
 0x42e   : > { %2567 = vst [vmem:[%s3483_s27 + $0x8] sm:$0xff] %v2559_v17  ;;  %v2506_v36 = vpop.f32.mrf.mxu3  ;;  %v4417_v39 = vadd.f32 1.0, %v3291_v61  ;;  %v3293_v54 = vpop.eup %3292  ;;  %vm2108_vm11 = vmor %vm2106_vm10, %vm2107_vm9 }
 0x42f   : > { %v2535_v23 = vpop.f32.mrf.mxu0  ;;  %v2103_v27 = vsub.f32 1.0, %v2102_v63  ;;  %v2025_v15 = vadd.f32 1.0, %v3293_v54 }
 0x430   : > { %v2536_v30 = vadd.f32 %v2535_v23, %v2506_v36  ;;  %3294 = vrcp.f32 %v4417_v39  ;;  %v2127_v16 = vand.u32 2147483648, %v4417_v39  ;;  %vm2121_vm14 = vweird.f32 %v4417_v39 }
 0x431   : > { %v2104_v19 = vmul.f32 %v3289_v37, %v2103_v27  ;;  %3296 = vrcp.f32 %v2025_v15  ;;  %v2125_v1 = vand.u32 2147483647, %v4417_v39  ;;  %v2142_v47 = vand.u32 2147483648, %v2025_v15 }
 0x432   : > { %v2552_v38 = vmul.f32 %v2536_v30, %v2069_v33  ;;  %v2128_v30 = vor.u32 1.1754944e-38, %v2127_v16  ;;  %vm2136_vm2 = vweird.f32 %v2025_v15  ;;  %v2140_v12 = vand.u32 2147483647, %v2025_v15 }
 0x433   : > { %vm2126_vm0 = vcmp.eq.f32.partialorder %v2125_v1, 8.507059e+37  ;;  %v2143_v4 = vor.u32 1.1754944e-38, %v2142_v47 }
 0x434   : > { %v2560_v20 = vadd.f32 %v2552_v38, %v4002_v46  ;;  %vm2141_vm4 = vcmp.eq.f32.partialorder %v2140_v12, 8.507059e+37 }
 0x436   : > { %2568 = vst [vmem:[%s3483_s27 + $0x10] sm:$0xff] %v2560_v20  ;;  %v2508_v51 = vpop.f32.mrf.mxu3  ;;  %v3295_v48 = vpop.eup %3294 }
 0x437   : > { %v2537_v56 = vpop.f32.mrf.mxu0  ;;  %v2117_v62 = vmul.f32 %v3295_v48, %v4417_v39  ;;  %v3297_v55 = vpop.eup %3296  ;;  %vm2122_vm13 = vweird.f32 %v3295_v48 }
 0x438   : > { %v2538_v46 = vadd.f32 %v2537_v56, %v2508_v51  ;;  %v2132_v24 = vmul.f32 %v3297_v55, %v2025_v15  ;;  %vm2123_vm15 = vmor %vm2121_vm14, %vm2122_vm13  ;;  %vm2137_vm1 = vweird.f32 %v3297_v55 }
 0x439   : > { %v2118_v13 = vsub.f32 1.0, %v2117_v62  ;;  %vm2138_vm3 = vmor %vm2136_vm2, %vm2137_vm1 }
 0x43a   : > { %v2553_v8 = vmul.f32 %v2538_v46, %v2084_v49  ;;  %v2133_v3 = vsub.f32 1.0, %v2132_v24 }
 0x43b   : > { %v2119_v17 = vmul.f32 %v3295_v48, %v2118_v13 }
 0x43c   : > { %v2561_v35 = vadd.f32 %v2553_v8, %v4010_v31  ;;  %v2105_v31 = vadd.f32 %v3289_v37, %v2104_v19  ;;  %v2134_v23 = vmul.f32 %v3297_v55, %v2133_v3 }
 0x43d   : > { %v2120_v22 = vadd.f32 %v3295_v48, %v2119_v17 }
 0x43e   : > { %2569 = vst [vmem:[%s3483_s27 + $0x18] sm:$0xff] %v2561_v35  ;;  %v2511_v57 = vpop.f32.mrf.mxu3  ;;  %v2109_v9 = vsel %vm2108_vm11, %v3289_v37, %v2105_v31  ;;  %v2135_v53 = vadd.f32 %v3297_v55, %v2134_v23 }
 0x43f   : > { %v2540_v32 = vpop.f32.mrf.mxu0  ;;  %v2114_v40 = vsel %vm2111_vm12, %v2113_v43, %v2109_v9  ;;  %v2124_v7 = vsel %vm2123_vm15, %v3295_v48, %v2120_v22 }
 0x440   : > { %v2541_v59 = vadd.f32 %v2540_v32, %v2511_v57  ;;  %v2129_v45 = vsel %vm2126_vm0, %v2128_v30, %v2124_v7  ;;  %v2139_v61 = vsel %vm2138_vm3, %v3297_v55, %v2135_v53 }
 0x441   : > { %v2144_v63 = vsel %vm2141_vm4, %v2143_v4, %v2139_v61 }
 0x442   : > { %v2554_v6 = vmul.f32 %v2541_v59, %v2099_v34 }
 0x444   : > { %v2562_v0 = vadd.f32 %v2554_v6, %v4016_v44 }
 0x446   : > { %2570 = vst [vmem:[%s3483_s27 + $0x20] sm:$0xff] %v2562_v0  ;;  %v2513_v21 = vpop.f32.mrf.mxu3 }
 0x447   : > { %v2542_v60 = vpop.f32.mrf.mxu0 }
 0x448   : > { %v2543_v29 = vadd.f32 %v2542_v60, %v2513_v21 }
 0x44a   : > { %v2555_v28 = vmul.f32 %v2543_v29, %v2114_v40 }
 0x44c   : > { %v2563_v44 = vadd.f32 %v2555_v28, %v4022_v2 }
 0x44e   : > { %2571 = vst [vmem:[%s3483_s27 + $0x28] sm:$0xff] %v2563_v44  ;;  %v2516_v36 = vpop.f32.mrf.mxu3 }
 0x455   : > { %v2545_v33 = vpop.f32.mrf.mxu2 }
 0x456   : > { %v2546_v2 = vadd.f32 %v2545_v33, %v2516_v36  ;;  %v2518_v20 = vpop.f32.mrf.mxu3 }
 0x458   : > { %v2556_v38 = vmul.f32 %v2546_v2, %v2129_v45 }
 0x45a   : > { %v2564_v37 = vadd.f32 %v2556_v38, %v4028_v5 }
 0x45c   : > { %2572 = vst [vmem:[%s3483_s27 + $0x30] sm:$0xff] %v2564_v37 }
 0x45d   : > { %v2547_v26 = vpop.f32.mrf.mxu2 }
 0x45e   : > { %v2548_v50 = vadd.f32 %v2547_v26, %v2518_v20 }
 0x460   : > { %v2557_v39 = vmul.f32 %v2548_v50, %v2144_v63 }
 0x462   : > { %v2565_v51 = vadd.f32 %v2557_v39, %v4034_v10 }
 0x464   : > { %2573 = vst [vmem:[%s3483_s27 + $0x38] sm:$0xff] %v2565_v51 }
 0x465 PF: > { %s29_s20 = sadd.s32 1, %s3336_s20   ;;  %s4489_s0 = smov %s3332_s30 }
 0x466   : > { %p26_p7 = scmp.ge.s32.totalorder %s29_s20, 4   ;;  %s4490_s30 = smov %s4492_s21 }
 0x468   :  { %28 = sbr.rel (!%p26_p7) target bundleno = 5 (0x5), region = 155 }

</bundles_post_ra>
